<compile_context>
chip_gen: v7x
topology: tpu7x:2x2x1
jax: 0.10.0
libtpu: 0.0.40
codegen_flags: <defaults>
</compile_context>

<pallas_src>
import functools

import jax
import jax.numpy as jnp
from jax.experimental import pallas as pl
from jax.experimental.pallas import tpu as pltpu


def _lstm_agent_kernel(x_ref,       # (t_tile*B_pad, D)  time-major chunk; row = t*B_pad + b
                       wih_ref,     # (D, 4H)  input->gates weights (transposed, [i|f|o|g])
                       whh_ref,     # (H, 4H)  hidden->gates weights (transposed, [i|f|o|g])
                       b_ref,       # (1, 4H)  combined bias (b_ih + b_hh), f32
                       wout_ref,    # (H, O)   linear head weight (transposed)
                       bout_ref,    # (1, O)   linear head bias, f32
                       h0_ref,      # (B_pad, H) f32
                       c0_ref,      # (B_pad, H) f32
                       out_ref,     # (B_pad, O) f32   linear(lstm_out[:, -1, :])
                       hn_ref,      # (B_pad, H) f32   final hidden state
                       cn_ref,      # (B_pad, H) f32   final cell state
                       xg_scr,      # VMEM (t_tile*B_pad, 4H) f32 -- chunk input projection
                       h_scr,       # VMEM (B_pad, H) f32 -- state carried across T-chunks
                       c_scr,       # VMEM (B_pad, H) f32
                       *, t_tile, b_pad, seq_len, n_chunks):
    H = hn_ref.shape[1]
    t_idx = pl.program_id(0)

    @pl.when(t_idx == 0)
    def _init():
        h_scr[...] = h0_ref[...]
        c_scr[...] = c0_ref[...]
        # out/hn/cn use constant index maps (single resident block, written back
        # once at grid end); initialize so no step can write back undefined VMEM.
        out_ref[...] = jnp.zeros_like(out_ref)
        hn_ref[...] = h0_ref[...]
        cn_ref[...] = c0_ref[...]

    # Hoisted input projection for the whole chunk: ONE MXU matmul with f32
    # accumulation + a single bias broadcast.  Stored into a VMEM scratch so the
    # (rows, 4H) slab is not kept live in vregs across the unrolled recurrence.
    xg_scr[...] = (jnp.dot(x_ref[...], wih_ref[...],
                           preferred_element_type=jnp.float32) + b_ref[...])

    cdt = whh_ref.dtype
    h = h_scr[...]                       # (B_pad, H) f32 -- lives in vregs for the chunk
    c = c_scr[...]

    # Recurrence: fully unrolled (static trip count).  Only the unavoidable
    # h @ W_hh dependency sits on the serial path; W_hh and the per-step xg
    # slab come from VMEM each step (load slots have slack, vregs stay low).
    for t in range(t_tile):
        xg_t = xg_scr[t * b_pad:(t + 1) * b_pad, :]          # static, 8-row aligned
        gates = xg_t + jnp.dot(h.astype(cdt), whh_ref[...],
                               preferred_element_type=jnp.float32)   # (B_pad, 4H)
        # sigmoid(x) = 0.5*tanh(0.5*x) + 0.5 : one EUP pass for the [i|f|o] slab.
        sig = 0.5 * jnp.tanh(0.5 * gates[:, 0:3 * H]) + 0.5
        g_g = jnp.tanh(gates[:, 3 * H:4 * H])
        i_g = sig[:, 0:H]
        f_g = sig[:, H:2 * H]
        o_g = sig[:, 2 * H:3 * H]
        c_new = f_g * c + i_g * g_g
        h_new = o_g * jnp.tanh(c_new)
        # Only the last chunk may contain padded timesteps; mask them with a
        # cheap VPU select.  Statically a no-op for always-valid steps.
        if (n_chunks - 1) * t_tile + t >= seq_len:
            valid = (t_idx * t_tile + t) < seq_len
            c = jnp.where(valid, c_new, c)
            h = jnp.where(valid, h_new, h)
        else:
            c = c_new
            h = h_new

    h_scr[...] = h
    c_scr[...] = c

    @pl.when(t_idx == n_chunks - 1)
    def _finalize():
        hn_ref[...] = h
        cn_ref[...] = c
        out_ref[...] = (jnp.dot(h.astype(wout_ref.dtype), wout_ref[...],
                                preferred_element_type=jnp.float32)
                        + bout_ref[...])


def _round_up(x, m):
    return ((x + m - 1) // m) * m


def _choose_tiling(T, max_unroll=16):
    """Return (t_tile, T_pad).  Never fully unrolls a long sequence: pick a
    divisor of T up to max_unroll, otherwise pad T to a multiple of max_unroll
    (padded steps are masked in-kernel)."""
    if T <= max_unroll:
        return T, T
    best = 1
    for d in range(1, max_unroll + 1):
        if T % d == 0:
            best = d
    if best >= max(2, max_unroll // 2):
        return best, T
    return max_unroll, _round_up(T, max_unroll)


def _estimate_vmem_bytes(rows, D, H, O, b_pad, compute_dtype):
    """Rough VMEM footprint with (8,128) tile padding; x2 for Pallas
    double-buffering plus 1 MiB slack.  Keeps the claim tight (matters on v7x)."""
    cb = jnp.dtype(compute_dtype).itemsize
    lane = lambda n: _round_up(max(int(n), 1), 128)
    sub = lambda n: _round_up(max(int(n), 1), 8)
    G = 4 * H
    bufs = (sub(rows) * lane(D) * cb                     # x chunk
            + sub(D) * lane(G) * cb                      # W_ih^T
            + sub(H) * lane(G) * cb                      # W_hh^T
            + sub(1) * lane(G) * 4                       # bias
            + sub(H) * lane(O) * cb                      # W_out^T
            + sub(1) * lane(O) * 4                       # b_out
            + 2 * sub(b_pad) * lane(H) * 4               # h0, c0
            + sub(b_pad) * (lane(O) + 2 * lane(H)) * 4)  # out, hn, cn
    scratch = sub(rows) * lane(G) * 4 + 2 * sub(b_pad) * lane(H) * 4
    total = 2 * bufs + scratch + (1 << 20)
    return int(min(max(total, 2 << 20), 48 << 20))


@functools.partial(jax.jit, static_argnames=("compute_dtype", "t_tile"))
def lstm_agent_forward(x, hidden, params, *, compute_dtype=jnp.bfloat16,
                       t_tile=None):
    """x: (B, T, D) batch_first like PyTorch; hidden: (h0, c0) each (1, B, H).

    Returns (output, (h_n, c_n)) matching LSTMAgent.forward:
      output: (B, output_dim); h_n, c_n: (1, B, H).
    """
    h0, c0 = hidden
    B, T, D = x.shape
    H = params["w_hh"].shape[1]
    O = params["w_out"].shape[0]
    G = 4 * H
    # Pad batch rows to the f32 sublane count so per-step slices / state / stores
    # are (8,128)-tile aligned (removes per-step XLU work on the serial path).
    B_pad = _round_up(B, 8)

    if t_tile is None:
        t_tile, T_pad = _choose_tiling(T)
    else:
        T_pad = _round_up(T, t_tile)
    n_t = T_pad // t_tile
    rows = t_tile * B_pad

    # --- Glue (plain JAX): gate reorder, transposes, padding, dtype casts. ---
    def _reorder_gates(w):      # PyTorch row blocks [i, f, g, o] -> [i, f, o, g]
        i, f, g, o = jnp.split(w, 4, axis=0)
        return jnp.concatenate([i, f, o, g], axis=0)

    wih_t = _reorder_gates(params["w_ih"]).T.astype(compute_dtype)       # (D, 4H)
    whh_t = _reorder_gates(params["w_hh"]).T.astype(compute_dtype)       # (H, 4H)
    bias = _reorder_gates(
        (params["b_ih"] + params["b_hh"]).reshape(G, 1)
    ).reshape(1, G).astype(jnp.float32)                                  # (1, 4H)
    wout_t = params["w_out"].T.astype(compute_dtype)                     # (H, O)
    bout = params["b_out"].reshape(1, O).astype(jnp.float32)

    h0_2d = jnp.zeros((B_pad, H), jnp.float32).at[:B].set(
        h0.reshape(B, H).astype(jnp.float32))
    c0_2d = jnp.zeros((B_pad, H), jnp.float32).at[:B].set(
        c0.reshape(B, H).astype(jnp.float32))

    # Time-major, batch padded; row index = t*B_pad + b.  Padded rows are zero
    # and (for padded timesteps) masked in-kernel.
    x_tm = jnp.transpose(x, (1, 0, 2))                                   # (T, B, D)
    x_tm = jnp.pad(x_tm, ((0, T_pad - T), (0, B_pad - B), (0, 0)))
    x_tm = x_tm.reshape(T_pad * B_pad, D).astype(compute_dtype)

    const2d = lambda *_: (0, 0)   # weights / state: block index never changes

    kernel = functools.partial(_lstm_agent_kernel,
                               t_tile=t_tile, b_pad=B_pad,
                               seq_len=T, n_chunks=n_t)

    # TODO(synk): for B >= 16, add a leading "parallel" batch-block grid axis so
    # the second v7x TensorCore runs an independent recurrence; no-op at B=2.
    out_p, hn_p, cn_p = pl.pallas_call(
        kernel,
        out_shape=(
            jax.ShapeDtypeStruct((B_pad, O), jnp.float32),
            jax.ShapeDtypeStruct((B_pad, H), jnp.float32),
            jax.ShapeDtypeStruct((B_pad, H), jnp.float32),
        ),
        grid=(n_t,),
        in_specs=[
            pl.BlockSpec((rows, D), lambda t: (t, 0)),   # x chunk, double-buffered DMA
            pl.BlockSpec((D, G), const2d),               # W_ih^T
            pl.BlockSpec((H, G), const2d),               # W_hh^T
            pl.BlockSpec((1, G), const2d),               # b_ih + b_hh
            pl.BlockSpec((H, O), const2d),               # W_out^T
            pl.BlockSpec((1, O), const2d),               # b_out
            pl.BlockSpec((B_pad, H), const2d),           # h0
            pl.BlockSpec((B_pad, H), const2d),           # c0
        ],
        out_specs=(
            pl.BlockSpec((B_pad, O), const2d),
            pl.BlockSpec((B_pad, H), const2d),
            pl.BlockSpec((B_pad, H), const2d),
        ),
        scratch_shapes=[
            pltpu.VMEM((rows, G), jnp.float32),    # chunk input projection (xg)
            pltpu.VMEM((B_pad, H), jnp.float32),   # h carried across T-chunks
            pltpu.VMEM((B_pad, H), jnp.float32),   # c carried across T-chunks
        ],
        compiler_params=pltpu.CompilerParams(
            dimension_semantics=("arbitrary",),            # serial recurrence over T
            vmem_limit_bytes=_estimate_vmem_bytes(rows, D, H, O, B_pad,
                                                  compute_dtype),
        ),
    )(x_tm, wih_t, whh_t, bias, wout_t, bout, h0_2d, c0_2d)

    out = out_p[:B]
    h_n = hn_p[:B].reshape(1, B, H)
    c_n = cn_p[:B].reshape(1, B, H)
    return out, (h_n, c_n)


def init_params(key, input_dim, hidden_dim, output_dim):
    """Deterministic init matching PyTorch default U(-1/sqrt(H), 1/sqrt(H)) shapes."""
    ks = jax.random.split(key, 6)
    bound = 1.0 / jnp.sqrt(jnp.float32(hidden_dim))
    u = lambda k, shape: jax.random.uniform(k, shape, jnp.float32, -bound, bound)
    return {
        "w_ih": u(ks[0], (4 * hidden_dim, input_dim)),
        "w_hh": u(ks[1], (4 * hidden_dim, hidden_dim)),
        "b_ih": u(ks[2], (4 * hidden_dim,)),
        "b_hh": u(ks[3], (4 * hidden_dim,)),
        "w_out": u(ks[4], (output_dim, hidden_dim)),
        "b_out": u(ks[5], (output_dim,)),
    }


def _reference_forward(x, hidden, params):
    """Pure-JAX reference of the PyTorch LSTM semantics (gate order i,f,g,o)."""
    h = hidden[0][0]
    c = hidden[1][0]
    H = params["w_hh"].shape[1]
    hp = jax.lax.Precision.HIGHEST
    for t in range(x.shape[1]):
        x_t = x[:, t, :]
        gates = (jnp.dot(x_t, params["w_ih"].T, precision=hp) + params["b_ih"]
                 + jnp.dot(h, params["w_hh"].T, precision=hp) + params["b_hh"])
        i_g = jax.nn.sigmoid(gates[:, 0:H])
        f_g = jax.nn.sigmoid(gates[:, H:2 * H])
        g_g = jnp.tanh(gates[:, 2 * H:3 * H])
        o_g = jax.nn.sigmoid(gates[:, 3 * H:4 * H])
        c = f_g * c + i_g * g_g
        h = o_g * jnp.tanh(c)
    out = jnp.dot(h, params["w_out"].T, precision=hp) + params["b_out"]
    return out, (h[None], c[None])


if __name__ == "__main__":
    # CartPole-v1: observation dim = 4, action dim = 2; hidden_dim = 128 as in spec.
    input_dim, hidden_dim, output_dim = 4, 128, 2
    batch, seq = 2, 8

    key = jax.random.PRNGKey(0)
    k_param, k_x = jax.random.split(key)
    params = init_params(k_param, input_dim, hidden_dim, output_dim)

    x = jax.random.normal(k_x, (batch, seq, input_dim), jnp.float32)
    # init_hidden() equivalent (zeros), broadcast to the actual batch size.
    h0 = jnp.zeros((1, batch, hidden_dim), jnp.float32)
    c0 = jnp.zeros((1, batch, hidden_dim), jnp.float32)

    out_ref, (h_ref, c_ref) = _reference_forward(x, (h0, c0), params)

    # Default path: bf16 matmul operands, f32 accumulation / state.
    out, (h_n, c_n) = lstm_agent_forward(x, (h0, c0), params)
    jax.block_until_ready((out, h_n, c_n))

    assert out.shape == (batch, output_dim)
    assert h_n.shape == (1, batch, hidden_dim) and c_n.shape == (1, batch, hidden_dim)
    assert jnp.allclose(out, out_ref, atol=5e-2, rtol=5e-2)
    assert jnp.allclose(h_n, h_ref, atol=5e-2, rtol=5e-2)
    assert jnp.allclose(c_n, c_ref, atol=5e-2, rtol=5e-2)

    # Tighter sanity check with f32 matmul operands (same kernel, different cast).
    out32, (h32, c32) = lstm_agent_forward(x, (h0, c0), params,
                                           compute_dtype=jnp.float32)
    jax.block_until_ready(out32)
    assert jnp.allclose(out32, out_ref, atol=1e-2, rtol=1e-2)
    assert jnp.allclose(h32, h_ref, atol=1e-2, rtol=1e-2)
    assert jnp.allclose(c32, c_ref, atol=1e-2, rtol=1e-2)

    # Exercise the tail-masking / chunking path (T not a "nice" multiple).
    x2 = jax.random.normal(jax.random.PRNGKey(1), (batch, 13, input_dim), jnp.float32)
    out2, (h2, c2) = lstm_agent_forward(x2, (h0, c0), params, t_tile=4)
    jax.block_until_ready(out2)
    out2_ref, (h2_ref, c2_ref) = _reference_forward(x2, (h0, c0), params)
    assert jnp.allclose(out2, out2_ref, atol=5e-2, rtol=5e-2)
    assert jnp.allclose(h2, h2_ref, atol=5e-2, rtol=5e-2)
    assert jnp.allclose(c2, c2_ref, atol=5e-2, rtol=5e-2)

    print("KERNEL_OK")
</pallas_src>

<mosaic_0001>
module attributes {stable_mosaic.version = 11 : i64} {
  func.func @_lstm_agent_kernel(%arg0: i32, %arg1: memref<64x4xbf16, #tpu.memory_space<vmem>>, %arg2: memref<4x512xbf16, #tpu.memory_space<vmem>>, %arg3: memref<128x512xbf16, #tpu.memory_space<vmem>>, %arg4: memref<1x512xf32, #tpu.memory_space<vmem>>, %arg5: memref<128x2xbf16, #tpu.memory_space<vmem>>, %arg6: memref<1x2xf32, #tpu.memory_space<vmem>>, %arg7: memref<8x128xf32, #tpu.memory_space<vmem>>, %arg8: memref<8x128xf32, #tpu.memory_space<vmem>>, %arg9: memref<8x2xf32, #tpu.memory_space<vmem>>, %arg10: memref<8x128xf32, #tpu.memory_space<vmem>>, %arg11: memref<8x128xf32, #tpu.memory_space<vmem>>, %arg12: memref<64x512xf32, #tpu.memory_space<vmem>>, %arg13: memref<8x128xf32, #tpu.memory_space<vmem>>, %arg14: memref<8x128xf32, #tpu.memory_space<vmem>>) attributes {dimension_semantics = [#tpu.dimension_semantics<arbitrary>], iteration_bounds = array<i64: 1>, scalar_prefetch = 0 : i64, scratch_operands = 3 : i64, tpu.core_type = #tpu.core_type<tc>, window_params = [{transform_indices = @transform_0, window_bounds = array<i64: 64, 4>}, {pipeline_mode = #tpu.pipeline_mode<synchronous>, transform_indices = @transform_1, window_bounds = array<i64: 4, 512>}, {pipeline_mode = #tpu.pipeline_mode<synchronous>, transform_indices = @transform_2, window_bounds = array<i64: 128, 512>}, {pipeline_mode = #tpu.pipeline_mode<synchronous>, transform_indices = @transform_3, window_bounds = array<i64: 1, 512>}, {pipeline_mode = #tpu.pipeline_mode<synchronous>, transform_indices = @transform_4, window_bounds = array<i64: 128, 2>}, {pipeline_mode = #tpu.pipeline_mode<synchronous>, transform_indices = @transform_5, window_bounds = array<i64: 1, 2>}, {pipeline_mode = #tpu.pipeline_mode<synchronous>, transform_indices = @transform_6, window_bounds = array<i64: 8, 128>}, {pipeline_mode = #tpu.pipeline_mode<synchronous>, transform_indices = @transform_7, window_bounds = array<i64: 8, 128>}, {pipeline_mode = #tpu.pipeline_mode<synchronous>, transform_indices = @transform_8, window_bounds = array<i64: 8, 2>}, {pipeline_mode = #tpu.pipeline_mode<synchronous>, transform_indices = @transform_9, window_bounds = array<i64: 8, 128>}, {pipeline_mode = #tpu.pipeline_mode<synchronous>, transform_indices = @transform_10, window_bounds = array<i64: 8, 128>}]} {
    %c0_i32 = arith.constant 0 : i32
    %0 = arith.cmpi eq, %arg0, %c0_i32 : i32
    %1 = arith.extui %0 : i1 to i32
    %c0_i32_0 = arith.constant 0 : i32
    %2 = arith.cmpi ne, %1, %c0_i32_0 : i32
    scf.if %2 {
      %c0_75 = arith.constant 0 : index
      %c0_76 = arith.constant 0 : index
      %201 = vector.load %arg7[%c0_75, %c0_76] : memref<8x128xf32, #tpu.memory_space<vmem>>, vector<8x128xf32>
      %c0_77 = arith.constant 0 : index
      %c0_78 = arith.constant 0 : index
      %202 = vector.load %arg13[%c0_77, %c0_78] : memref<8x128xf32, #tpu.memory_space<vmem>>, vector<8x128xf32>
      tpu.vector_store %arg13[%c0_77, %c0_78], %201 {strides = array<i32>} : memref<8x128xf32, #tpu.memory_space<vmem>>, vector<8x128xf32>,
      %c0_79 = arith.constant 0 : index
      %c0_80 = arith.constant 0 : index
      %203 = vector.load %arg8[%c0_79, %c0_80] : memref<8x128xf32, #tpu.memory_space<vmem>>, vector<8x128xf32>
      %c0_81 = arith.constant 0 : index
      %c0_82 = arith.constant 0 : index
      %204 = vector.load %arg14[%c0_81, %c0_82] : memref<8x128xf32, #tpu.memory_space<vmem>>, vector<8x128xf32>
      tpu.vector_store %arg14[%c0_81, %c0_82], %203 {strides = array<i32>} : memref<8x128xf32, #tpu.memory_space<vmem>>, vector<8x128xf32>,
      %cst_83 = arith.constant 0.000000e+00 : f32
      %205 = vector.broadcast %cst_83 : f32 to vector<8x2xf32>
      %c0_84 = arith.constant 0 : index
      %c0_85 = arith.constant 0 : index
      %206 = vector.load %arg9[%c0_84, %c0_85] : memref<8x2xf32, #tpu.memory_space<vmem>>, vector<8x2xf32>
      tpu.vector_store %arg9[%c0_84, %c0_85], %205 {strides = array<i32>} : memref<8x2xf32, #tpu.memory_space<vmem>>, vector<8x2xf32>,
      %c0_86 = arith.constant 0 : index
      %c0_87 = arith.constant 0 : index
      %207 = vector.load %arg7[%c0_86, %c0_87] : memref<8x128xf32, #tpu.memory_space<vmem>>, vector<8x128xf32>
      %c0_88 = arith.constant 0 : index
      %c0_89 = arith.constant 0 : index
      %208 = vector.load %arg10[%c0_88, %c0_89] : memref<8x128xf32, #tpu.memory_space<vmem>>, vector<8x128xf32>
      tpu.vector_store %arg10[%c0_88, %c0_89], %207 {strides = array<i32>} : memref<8x128xf32, #tpu.memory_space<vmem>>, vector<8x128xf32>,
      %c0_90 = arith.constant 0 : index
      %c0_91 = arith.constant 0 : index
      %209 = vector.load %arg8[%c0_90, %c0_91] : memref<8x128xf32, #tpu.memory_space<vmem>>, vector<8x128xf32>
      %c0_92 = arith.constant 0 : index
      %c0_93 = arith.constant 0 : index
      %210 = vector.load %arg11[%c0_92, %c0_93] : memref<8x128xf32, #tpu.memory_space<vmem>>, vector<8x128xf32>
      tpu.vector_store %arg11[%c0_92, %c0_93], %209 {strides = array<i32>} : memref<8x128xf32, #tpu.memory_space<vmem>>, vector<8x128xf32>,
    } else {
    }
    %c0 = arith.constant 0 : index
    %c0_1 = arith.constant 0 : index
    %3 = vector.load %arg1[%c0, %c0_1] : memref<64x4xbf16, #tpu.memory_space<vmem>>, vector<64x4xbf16>
    %c0_2 = arith.constant 0 : index
    %c0_3 = arith.constant 0 : index
    %4 = vector.load %arg2[%c0_2, %c0_3] : memref<4x512xbf16, #tpu.memory_space<vmem>>, vector<4x512xbf16>
    %cst = arith.constant dense<0.000000e+00> : vector<64x512xf32>
    %5 = tpu.matmul %3, %4, %cst {dimension_numbers = #tpu.dot_dimension_numbers<[1], [0], [0], [1], [0, 0, 1, 1], [], []>} : vector<64x4xbf16>, vector<4x512xbf16>, vector<64x512xf32> -> vector<64x512xf32>
    %c0_4 = arith.constant 0 : index
    %c0_5 = arith.constant 0 : index
    %6 = vector.load %arg4[%c0_4, %c0_5] : memref<1x512xf32, #tpu.memory_space<vmem>>, vector<1x512xf32>
    %7 = vector.broadcast %6 : vector<1x512xf32> to vector<64x512xf32>
    %8 = arith.addf %5, %7 : vector<64x512xf32>
    %c0_6 = arith.constant 0 : index
    %c0_7 = arith.constant 0 : index
    %9 = vector.load %arg12[%c0_6, %c0_7] : memref<64x512xf32, #tpu.memory_space<vmem>>, vector<64x512xf32>
    tpu.vector_store %arg12[%c0_6, %c0_7], %8 {strides = array<i32>} : memref<64x512xf32, #tpu.memory_space<vmem>>, vector<64x512xf32>,
    %c0_8 = arith.constant 0 : index
    %c0_9 = arith.constant 0 : index
    %10 = vector.load %arg13[%c0_8, %c0_9] : memref<8x128xf32, #tpu.memory_space<vmem>>, vector<8x128xf32>
    %c0_10 = arith.constant 0 : index
    %c0_11 = arith.constant 0 : index
    %11 = vector.load %arg14[%c0_10, %c0_11] : memref<8x128xf32, #tpu.memory_space<vmem>>, vector<8x128xf32>
    %c0_12 = arith.constant 0 : index
    %c0_13 = arith.constant 0 : index
    %12 = vector.load %arg12[%c0_12, %c0_13] : memref<64x512xf32, #tpu.memory_space<vmem>>, vector<8x512xf32>
    %13 = arith.truncf %10 : vector<8x128xf32> to vector<8x128xbf16>
    %c0_14 = arith.constant 0 : index
    %c0_15 = arith.constant 0 : index
    %14 = vector.load %arg3[%c0_14, %c0_15] : memref<128x512xbf16, #tpu.memory_space<vmem>>, vector<128x512xbf16>
    %cst_16 = arith.constant dense<0.000000e+00> : vector<8x512xf32>
    %15 = tpu.matmul %13, %14, %cst_16 {dimension_numbers = #tpu.dot_dimension_numbers<[1], [0], [0], [1], [0, 0, 1, 1], [], []>} : vector<8x128xbf16>, vector<128x512xbf16>, vector<8x512xf32> -> vector<8x512xf32>
    %16 = arith.addf %12, %15 : vector<8x512xf32>
    %17 = vector.extract_strided_slice %16 {offsets = [0, 0], sizes = [8, 384], strides = [1, 1]} : vector<8x512xf32> to vector<8x384xf32>
    %cst_17 = arith.constant 5.000000e-01 : f32
    %18 = vector.broadcast %cst_17 : f32 to vector<8x384xf32>
    %19 = arith.mulf %18, %17 : vector<8x384xf32>
    %20 = math.tanh %19 : vector<8x384xf32>
    %cst_18 = arith.constant 5.000000e-01 : f32
    %21 = vector.broadcast %cst_18 : f32 to vector<8x384xf32>
    %22 = arith.mulf %21, %20 : vector<8x384xf32>
    %cst_19 = arith.constant 5.000000e-01 : f32
    %23 = vector.broadcast %cst_19 : f32 to vector<8x384xf32>
    %24 = arith.addf %22, %23 : vector<8x384xf32>
    %25 = vector.extract_strided_slice %16 {offsets = [0, 384], sizes = [8, 128], strides = [1, 1]} : vector<8x512xf32> to vector<8x128xf32>
    %26 = math.tanh %25 : vector<8x128xf32>
    %27 = vector.extract_strided_slice %24 {offsets = [0, 0], sizes = [8, 128], strides = [1, 1]} : vector<8x384xf32> to vector<8x128xf32>
    %28 = vector.extract_strided_slice %24 {offsets = [0, 128], sizes = [8, 128], strides = [1, 1]} : vector<8x384xf32> to vector<8x128xf32>
    %29 = vector.extract_strided_slice %24 {offsets = [0, 256], sizes = [8, 128], strides = [1, 1]} : vector<8x384xf32> to vector<8x128xf32>
    %30 = arith.mulf %28, %11 : vector<8x128xf32>
    %31 = arith.mulf %27, %26 : vector<8x128xf32>
    %32 = arith.addf %30, %31 : vector<8x128xf32>
    %33 = math.tanh %32 : vector<8x128xf32>
    %34 = arith.mulf %29, %33 : vector<8x128xf32>
    %c8 = arith.constant 8 : index
    %c0_20 = arith.constant 0 : index
    %35 = vector.load %arg12[%c8, %c0_20] : memref<64x512xf32, #tpu.memory_space<vmem>>, vector<8x512xf32>
    %36 = arith.truncf %34 : vector<8x128xf32> to vector<8x128xbf16>
    %c0_21 = arith.constant 0 : index
    %c0_22 = arith.constant 0 : index
    %37 = vector.load %arg3[%c0_21, %c0_22] : memref<128x512xbf16, #tpu.memory_space<vmem>>, vector<128x512xbf16>
    %cst_23 = arith.constant dense<0.000000e+00> : vector<8x512xf32>
    %38 = tpu.matmul %36, %37, %cst_23 {dimension_numbers = #tpu.dot_dimension_numbers<[1], [0], [0], [1], [0, 0, 1, 1], [], []>} : vector<8x128xbf16>, vector<128x512xbf16>, vector<8x512xf32> -> vector<8x512xf32>
    %39 = arith.addf %35, %38 : vector<8x512xf32>
    %40 = vector.extract_strided_slice %39 {offsets = [0, 0], sizes = [8, 384], strides = [1, 1]} : vector<8x512xf32> to vector<8x384xf32>
    %cst_24 = arith.constant 5.000000e-01 : f32
    %41 = vector.broadcast %cst_24 : f32 to vector<8x384xf32>
    %42 = arith.mulf %41, %40 : vector<8x384xf32>
    %43 = math.tanh %42 : vector<8x384xf32>
    %cst_25 = arith.constant 5.000000e-01 : f32
    %44 = vector.broadcast %cst_25 : f32 to vector<8x384xf32>
    %45 = arith.mulf %44, %43 : vector<8x384xf32>
    %cst_26 = arith.constant 5.000000e-01 : f32
    %46 = vector.broadcast %cst_26 : f32 to vector<8x384xf32>
    %47 = arith.addf %45, %46 : vector<8x384xf32>
    %48 = vector.extract_strided_slice %39 {offsets = [0, 384], sizes = [8, 128], strides = [1, 1]} : vector<8x512xf32> to vector<8x128xf32>
    %49 = math.tanh %48 : vector<8x128xf32>
    %50 = vector.extract_strided_slice %47 {offsets = [0, 0], sizes = [8, 128], strides = [1, 1]} : vector<8x384xf32> to vector<8x128xf32>
    %51 = vector.extract_strided_slice %47 {offsets = [0, 128], sizes = [8, 128], strides = [1, 1]} : vector<8x384xf32> to vector<8x128xf32>
    %52 = vector.extract_strided_slice %47 {offsets = [0, 256], sizes = [8, 128], strides = [1, 1]} : vector<8x384xf32> to vector<8x128xf32>
    %53 = arith.mulf %51, %32 : vector<8x128xf32>
    %54 = arith.mulf %50, %49 : vector<8x128xf32>
    %55 = arith.addf %53, %54 : vector<8x128xf32>
    %56 = math.tanh %55 : vector<8x128xf32>
    %57 = arith.mulf %52, %56 : vector<8x128xf32>
    %c16 = arith.constant 16 : index
    %c0_27 = arith.constant 0 : index
    %58 = vector.load %arg12[%c16, %c0_27] : memref<64x512xf32, #tpu.memory_space<vmem>>, vector<8x512xf32>
    %59 = arith.truncf %57 : vector<8x128xf32> to vector<8x128xbf16>
    %c0_28 = arith.constant 0 : index
    %c0_29 = arith.constant 0 : index
    %60 = vector.load %arg3[%c0_28, %c0_29] : memref<128x512xbf16, #tpu.memory_space<vmem>>, vector<128x512xbf16>
    %cst_30 = arith.constant dense<0.000000e+00> : vector<8x512xf32>
    %61 = tpu.matmul %59, %60, %cst_30 {dimension_numbers = #tpu.dot_dimension_numbers<[1], [0], [0], [1], [0, 0, 1, 1], [], []>} : vector<8x128xbf16>, vector<128x512xbf16>, vector<8x512xf32> -> vector<8x512xf32>
    %62 = arith.addf %58, %61 : vector<8x512xf32>
    %63 = vector.extract_strided_slice %62 {offsets = [0, 0], sizes = [8, 384], strides = [1, 1]} : vector<8x512xf32> to vector<8x384xf32>
    %cst_31 = arith.constant 5.000000e-01 : f32
    %64 = vector.broadcast %cst_31 : f32 to vector<8x384xf32>
    %65 = arith.mulf %64, %63 : vector<8x384xf32>
    %66 = math.tanh %65 : vector<8x384xf32>
    %cst_32 = arith.constant 5.000000e-01 : f32
    %67 = vector.broadcast %cst_32 : f32 to vector<8x384xf32>
    %68 = arith.mulf %67, %66 : vector<8x384xf32>
    %cst_33 = arith.constant 5.000000e-01 : f32
    %69 = vector.broadcast %cst_33 : f32 to vector<8x384xf32>
    %70 = arith.addf %68, %69 : vector<8x384xf32>
    %71 = vector.extract_strided_slice %62 {offsets = [0, 384], sizes = [8, 128], strides = [1, 1]} : vector<8x512xf32> to vector<8x128xf32>
    %72 = math.tanh %71 : vector<8x128xf32>
    %73 = vector.extract_strided_slice %70 {offsets = [0, 0], sizes = [8, 128], strides = [1, 1]} : vector<8x384xf32> to vector<8x128xf32>
    %74 = vector.extract_strided_slice %70 {offsets = [0, 128], sizes = [8, 128], strides = [1, 1]} : vector<8x384xf32> to vector<8x128xf32>
    %75 = vector.extract_strided_slice %70 {offsets = [0, 256], sizes = [8, 128], strides = [1, 1]} : vector<8x384xf32> to vector<8x128xf32>
    %76 = arith.mulf %74, %55 : vector<8x128xf32>
    %77 = arith.mulf %73, %72 : vector<8x128xf32>
    %78 = arith.addf %76, %77 : vector<8x128xf32>
    %79 = math.tanh %78 : vector<8x128xf32>
    %80 = arith.mulf %75, %79 : vector<8x128xf32>
    %c24 = arith.constant 24 : index
    %c0_34 = arith.constant 0 : index
    %81 = vector.load %arg12[%c24, %c0_34] : memref<64x512xf32, #tpu.memory_space<vmem>>, vector<8x512xf32>
    %82 = arith.truncf %80 : vector<8x128xf32> to vector<8x128xbf16>
    %c0_35 = arith.constant 0 : index
    %c0_36 = arith.constant 0 : index
    %83 = vector.load %arg3[%c0_35, %c0_36] : memref<128x512xbf16, #tpu.memory_space<vmem>>, vector<128x512xbf16>
    %cst_37 = arith.constant dense<0.000000e+00> : vector<8x512xf32>
    %84 = tpu.matmul %82, %83, %cst_37 {dimension_numbers = #tpu.dot_dimension_numbers<[1], [0], [0], [1], [0, 0, 1, 1], [], []>} : vector<8x128xbf16>, vector<128x512xbf16>, vector<8x512xf32> -> vector<8x512xf32>
    %85 = arith.addf %81, %84 : vector<8x512xf32>
    %86 = vector.extract_strided_slice %85 {offsets = [0, 0], sizes = [8, 384], strides = [1, 1]} : vector<8x512xf32> to vector<8x384xf32>
    %cst_38 = arith.constant 5.000000e-01 : f32
    %87 = vector.broadcast %cst_38 : f32 to vector<8x384xf32>
    %88 = arith.mulf %87, %86 : vector<8x384xf32>
    %89 = math.tanh %88 : vector<8x384xf32>
    %cst_39 = arith.constant 5.000000e-01 : f32
    %90 = vector.broadcast %cst_39 : f32 to vector<8x384xf32>
    %91 = arith.mulf %90, %89 : vector<8x384xf32>
    %cst_40 = arith.constant 5.000000e-01 : f32
    %92 = vector.broadcast %cst_40 : f32 to vector<8x384xf32>
    %93 = arith.addf %91, %92 : vector<8x384xf32>
    %94 = vector.extract_strided_slice %85 {offsets = [0, 384], sizes = [8, 128], strides = [1, 1]} : vector<8x512xf32> to vector<8x128xf32>
    %95 = math.tanh %94 : vector<8x128xf32>
    %96 = vector.extract_strided_slice %93 {offsets = [0, 0], sizes = [8, 128], strides = [1, 1]} : vector<8x384xf32> to vector<8x128xf32>
    %97 = vector.extract_strided_slice %93 {offsets = [0, 128], sizes = [8, 128], strides = [1, 1]} : vector<8x384xf32> to vector<8x128xf32>
    %98 = vector.extract_strided_slice %93 {offsets = [0, 256], sizes = [8, 128], strides = [1, 1]} : vector<8x384xf32> to vector<8x128xf32>
    %99 = arith.mulf %97, %78 : vector<8x128xf32>
    %100 = arith.mulf %96, %95 : vector<8x128xf32>
    %101 = arith.addf %99, %100 : vector<8x128xf32>
    %102 = math.tanh %101 : vector<8x128xf32>
    %103 = arith.mulf %98, %102 : vector<8x128xf32>
    %c32 = arith.constant 32 : index
    %c0_41 = arith.constant 0 : index
    %104 = vector.load %arg12[%c32, %c0_41] : memref<64x512xf32, #tpu.memory_space<vmem>>, vector<8x512xf32>
    %105 = arith.truncf %103 : vector<8x128xf32> to vector<8x128xbf16>
    %c0_42 = arith.constant 0 : index
    %c0_43 = arith.constant 0 : index
    %106 = vector.load %arg3[%c0_42, %c0_43] : memref<128x512xbf16, #tpu.memory_space<vmem>>, vector<128x512xbf16>
    %cst_44 = arith.constant dense<0.000000e+00> : vector<8x512xf32>
    %107 = tpu.matmul %105, %106, %cst_44 {dimension_numbers = #tpu.dot_dimension_numbers<[1], [0], [0], [1], [0, 0, 1, 1], [], []>} : vector<8x128xbf16>, vector<128x512xbf16>, vector<8x512xf32> -> vector<8x512xf32>
    %108 = arith.addf %104, %107 : vector<8x512xf32>
    %109 = vector.extract_strided_slice %108 {offsets = [0, 0], sizes = [8, 384], strides = [1, 1]} : vector<8x512xf32> to vector<8x384xf32>
    %cst_45 = arith.constant 5.000000e-01 : f32
    %110 = vector.broadcast %cst_45 : f32 to vector<8x384xf32>
    %111 = arith.mulf %110, %109 : vector<8x384xf32>
    %112 = math.tanh %111 : vector<8x384xf32>
    %cst_46 = arith.constant 5.000000e-01 : f32
    %113 = vector.broadcast %cst_46 : f32 to vector<8x384xf32>
    %114 = arith.mulf %113, %112 : vector<8x384xf32>
    %cst_47 = arith.constant 5.000000e-01 : f32
    %115 = vector.broadcast %cst_47 : f32 to vector<8x384xf32>
    %116 = arith.addf %114, %115 : vector<8x384xf32>
    %117 = vector.extract_strided_slice %108 {offsets = [0, 384], sizes = [8, 128], strides = [1, 1]} : vector<8x512xf32> to vector<8x128xf32>
    %118 = math.tanh %117 : vector<8x128xf32>
    %119 = vector.extract_strided_slice %116 {offsets = [0, 0], sizes = [8, 128], strides = [1, 1]} : vector<8x384xf32> to vector<8x128xf32>
    %120 = vector.extract_strided_slice %116 {offsets = [0, 128], sizes = [8, 128], strides = [1, 1]} : vector<8x384xf32> to vector<8x128xf32>
    %121 = vector.extract_strided_slice %116 {offsets = [0, 256], sizes = [8, 128], strides = [1, 1]} : vector<8x384xf32> to vector<8x128xf32>
    %122 = arith.mulf %120, %101 : vector<8x128xf32>
    %123 = arith.mulf %119, %118 : vector<8x128xf32>
    %124 = arith.addf %122, %123 : vector<8x128xf32>
    %125 = math.tanh %124 : vector<8x128xf32>
    %126 = arith.mulf %121, %125 : vector<8x128xf32>
    %c40 = arith.constant 40 : index
    %c0_48 = arith.constant 0 : index
    %127 = vector.load %arg12[%c40, %c0_48] : memref<64x512xf32, #tpu.memory_space<vmem>>, vector<8x512xf32>
    %128 = arith.truncf %126 : vector<8x128xf32> to vector<8x128xbf16>
    %c0_49 = arith.constant 0 : index
    %c0_50 = arith.constant 0 : index
    %129 = vector.load %arg3[%c0_49, %c0_50] : memref<128x512xbf16, #tpu.memory_space<vmem>>, vector<128x512xbf16>
    %cst_51 = arith.constant dense<0.000000e+00> : vector<8x512xf32>
    %130 = tpu.matmul %128, %129, %cst_51 {dimension_numbers = #tpu.dot_dimension_numbers<[1], [0], [0], [1], [0, 0, 1, 1], [], []>} : vector<8x128xbf16>, vector<128x512xbf16>, vector<8x512xf32> -> vector<8x512xf32>
    %131 = arith.addf %127, %130 : vector<8x512xf32>
    %132 = vector.extract_strided_slice %131 {offsets = [0, 0], sizes = [8, 384], strides = [1, 1]} : vector<8x512xf32> to vector<8x384xf32>
    %cst_52 = arith.constant 5.000000e-01 : f32
    %133 = vector.broadcast %cst_52 : f32 to vector<8x384xf32>
    %134 = arith.mulf %133, %132 : vector<8x384xf32>
    %135 = math.tanh %134 : vector<8x384xf32>
    %cst_53 = arith.constant 5.000000e-01 : f32
    %136 = vector.broadcast %cst_53 : f32 to vector<8x384xf32>
    %137 = arith.mulf %136, %135 : vector<8x384xf32>
    %cst_54 = arith.constant 5.000000e-01 : f32
    %138 = vector.broadcast %cst_54 : f32 to vector<8x384xf32>
    %139 = arith.addf %137, %138 : vector<8x384xf32>
    %140 = vector.extract_strided_slice %131 {offsets = [0, 384], sizes = [8, 128], strides = [1, 1]} : vector<8x512xf32> to vector<8x128xf32>
    %141 = math.tanh %140 : vector<8x128xf32>
    %142 = vector.extract_strided_slice %139 {offsets = [0, 0], sizes = [8, 128], strides = [1, 1]} : vector<8x384xf32> to vector<8x128xf32>
    %143 = vector.extract_strided_slice %139 {offsets = [0, 128], sizes = [8, 128], strides = [1, 1]} : vector<8x384xf32> to vector<8x128xf32>
    %144 = vector.extract_strided_slice %139 {offsets = [0, 256], sizes = [8, 128], strides = [1, 1]} : vector<8x384xf32> to vector<8x128xf32>
    %145 = arith.mulf %143, %124 : vector<8x128xf32>
    %146 = arith.mulf %142, %141 : vector<8x128xf32>
    %147 = arith.addf %145, %146 : vector<8x128xf32>
    %148 = math.tanh %147 : vector<8x128xf32>
    %149 = arith.mulf %144, %148 : vector<8x128xf32>
    %c48 = arith.constant 48 : index
    %c0_55 = arith.constant 0 : index
    %150 = vector.load %arg12[%c48, %c0_55] : memref<64x512xf32, #tpu.memory_space<vmem>>, vector<8x512xf32>
    %151 = arith.truncf %149 : vector<8x128xf32> to vector<8x128xbf16>
    %c0_56 = arith.constant 0 : index
    %c0_57 = arith.constant 0 : index
    %152 = vector.load %arg3[%c0_56, %c0_57] : memref<128x512xbf16, #tpu.memory_space<vmem>>, vector<128x512xbf16>
    %cst_58 = arith.constant dense<0.000000e+00> : vector<8x512xf32>
    %153 = tpu.matmul %151, %152, %cst_58 {dimension_numbers = #tpu.dot_dimension_numbers<[1], [0], [0], [1], [0, 0, 1, 1], [], []>} : vector<8x128xbf16>, vector<128x512xbf16>, vector<8x512xf32> -> vector<8x512xf32>
    %154 = arith.addf %150, %153 : vector<8x512xf32>
    %155 = vector.extract_strided_slice %154 {offsets = [0, 0], sizes = [8, 384], strides = [1, 1]} : vector<8x512xf32> to vector<8x384xf32>
    %cst_59 = arith.constant 5.000000e-01 : f32
    %156 = vector.broadcast %cst_59 : f32 to vector<8x384xf32>
    %157 = arith.mulf %156, %155 : vector<8x384xf32>
    %158 = math.tanh %157 : vector<8x384xf32>
    %cst_60 = arith.constant 5.000000e-01 : f32
    %159 = vector.broadcast %cst_60 : f32 to vector<8x384xf32>
    %160 = arith.mulf %159, %158 : vector<8x384xf32>
    %cst_61 = arith.constant 5.000000e-01 : f32
    %161 = vector.broadcast %cst_61 : f32 to vector<8x384xf32>
    %162 = arith.addf %160, %161 : vector<8x384xf32>
    %163 = vector.extract_strided_slice %154 {offsets = [0, 384], sizes = [8, 128], strides = [1, 1]} : vector<8x512xf32> to vector<8x128xf32>
    %164 = math.tanh %163 : vector<8x128xf32>
    %165 = vector.extract_strided_slice %162 {offsets = [0, 0], sizes = [8, 128], strides = [1, 1]} : vector<8x384xf32> to vector<8x128xf32>
    %166 = vector.extract_strided_slice %162 {offsets = [0, 128], sizes = [8, 128], strides = [1, 1]} : vector<8x384xf32> to vector<8x128xf32>
    %167 = vector.extract_strided_slice %162 {offsets = [0, 256], sizes = [8, 128], strides = [1, 1]} : vector<8x384xf32> to vector<8x128xf32>
    %168 = arith.mulf %166, %147 : vector<8x128xf32>
    %169 = arith.mulf %165, %164 : vector<8x128xf32>
    %170 = arith.addf %168, %169 : vector<8x128xf32>
    %171 = math.tanh %170 : vector<8x128xf32>
    %172 = arith.mulf %167, %171 : vector<8x128xf32>
    %c56 = arith.constant 56 : index
    %c0_62 = arith.constant 0 : index
    %173 = vector.load %arg12[%c56, %c0_62] : memref<64x512xf32, #tpu.memory_space<vmem>>, vector<8x512xf32>
    %174 = arith.truncf %172 : vector<8x128xf32> to vector<8x128xbf16>
    %c0_63 = arith.constant 0 : index
    %c0_64 = arith.constant 0 : index
    %175 = vector.load %arg3[%c0_63, %c0_64] : memref<128x512xbf16, #tpu.memory_space<vmem>>, vector<128x512xbf16>
    %cst_65 = arith.constant dense<0.000000e+00> : vector<8x512xf32>
    %176 = tpu.matmul %174, %175, %cst_65 {dimension_numbers = #tpu.dot_dimension_numbers<[1], [0], [0], [1], [0, 0, 1, 1], [], []>} : vector<8x128xbf16>, vector<128x512xbf16>, vector<8x512xf32> -> vector<8x512xf32>
    %177 = arith.addf %173, %176 : vector<8x512xf32>
    %178 = vector.extract_strided_slice %177 {offsets = [0, 0], sizes = [8, 384], strides = [1, 1]} : vector<8x512xf32> to vector<8x384xf32>
    %cst_66 = arith.constant 5.000000e-01 : f32
    %179 = vector.broadcast %cst_66 : f32 to vector<8x384xf32>
    %180 = arith.mulf %179, %178 : vector<8x384xf32>
    %181 = math.tanh %180 : vector<8x384xf32>
    %cst_67 = arith.constant 5.000000e-01 : f32
    %182 = vector.broadcast %cst_67 : f32 to vector<8x384xf32>
    %183 = arith.mulf %182, %181 : vector<8x384xf32>
    %cst_68 = arith.constant 5.000000e-01 : f32
    %184 = vector.broadcast %cst_68 : f32 to vector<8x384xf32>
    %185 = arith.addf %183, %184 : vector<8x384xf32>
    %186 = vector.extract_strided_slice %177 {offsets = [0, 384], sizes = [8, 128], strides = [1, 1]} : vector<8x512xf32> to vector<8x128xf32>
    %187 = math.tanh %186 : vector<8x128xf32>
    %188 = vector.extract_strided_slice %185 {offsets = [0, 0], sizes = [8, 128], strides = [1, 1]} : vector<8x384xf32> to vector<8x128xf32>
    %189 = vector.extract_strided_slice %185 {offsets = [0, 128], sizes = [8, 128], strides = [1, 1]} : vector<8x384xf32> to vector<8x128xf32>
    %190 = vector.extract_strided_slice %185 {offsets = [0, 256], sizes = [8, 128], strides = [1, 1]} : vector<8x384xf32> to vector<8x128xf32>
    %191 = arith.mulf %189, %170 : vector<8x128xf32>
    %192 = arith.mulf %188, %187 : vector<8x128xf32>
    %193 = arith.addf %191, %192 : vector<8x128xf32>
    %194 = math.tanh %193 : vector<8x128xf32>
    %195 = arith.mulf %190, %194 : vector<8x128xf32>
    %c0_69 = arith.constant 0 : index
    %c0_70 = arith.constant 0 : index
    %196 = vector.load %arg13[%c0_69, %c0_70] : memref<8x128xf32, #tpu.memory_space<vmem>>, vector<8x128xf32>
    tpu.vector_store %arg13[%c0_69, %c0_70], %195 {strides = array<i32>} : memref<8x128xf32, #tpu.memory_space<vmem>>, vector<8x128xf32>,
    %c0_71 = arith.constant 0 : index
    %c0_72 = arith.constant 0 : index
    %197 = vector.load %arg14[%c0_71, %c0_72] : memref<8x128xf32, #tpu.memory_space<vmem>>, vector<8x128xf32>
    tpu.vector_store %arg14[%c0_71, %c0_72], %193 {strides = array<i32>} : memref<8x128xf32, #tpu.memory_space<vmem>>, vector<8x128xf32>,
    %c0_i32_73 = arith.constant 0 : i32
    %198 = arith.cmpi eq, %arg0, %c0_i32_73 : i32
    %199 = arith.extui %198 : i1 to i32
    %c0_i32_74 = arith.constant 0 : i32
    %200 = arith.cmpi ne, %199, %c0_i32_74 : i32
    scf.if %200 {
      %c0_75 = arith.constant 0 : index
      %c0_76 = arith.constant 0 : index
      %201 = vector.load %arg10[%c0_75, %c0_76] : memref<8x128xf32, #tpu.memory_space<vmem>>, vector<8x128xf32>
      tpu.vector_store %arg10[%c0_75, %c0_76], %195 {strides = array<i32>} : memref<8x128xf32, #tpu.memory_space<vmem>>, vector<8x128xf32>,
      %c0_77 = arith.constant 0 : index
      %c0_78 = arith.constant 0 : index
      %202 = vector.load %arg11[%c0_77, %c0_78] : memref<8x128xf32, #tpu.memory_space<vmem>>, vector<8x128xf32>
      tpu.vector_store %arg11[%c0_77, %c0_78], %193 {strides = array<i32>} : memref<8x128xf32, #tpu.memory_space<vmem>>, vector<8x128xf32>,
      %203 = arith.truncf %195 : vector<8x128xf32> to vector<8x128xbf16>
      %c0_79 = arith.constant 0 : index
      %c0_80 = arith.constant 0 : index
      %204 = vector.load %arg5[%c0_79, %c0_80] : memref<128x2xbf16, #tpu.memory_space<vmem>>, vector<128x2xbf16>
      %cst_81 = arith.constant dense<0.000000e+00> : vector<8x2xf32>
      %205 = tpu.matmul %203, %204, %cst_81 {dimension_numbers = #tpu.dot_dimension_numbers<[1], [0], [0], [1], [0, 0, 1, 1], [], []>} : vector<8x128xbf16>, vector<128x2xbf16>, vector<8x2xf32> -> vector<8x2xf32>
      %c0_82 = arith.constant 0 : index
      %c0_83 = arith.constant 0 : index
      %206 = vector.load %arg6[%c0_82, %c0_83] : memref<1x2xf32, #tpu.memory_space<vmem>>, vector<1x2xf32>
      %207 = vector.broadcast %206 : vector<1x2xf32> to vector<8x2xf32>
      %208 = arith.addf %205, %207 : vector<8x2xf32>
      %c0_84 = arith.constant 0 : index
      %c0_85 = arith.constant 0 : index
      %209 = vector.load %arg9[%c0_84, %c0_85] : memref<8x2xf32, #tpu.memory_space<vmem>>, vector<8x2xf32>
      tpu.vector_store %arg9[%c0_84, %c0_85], %208 {strides = array<i32>} : memref<8x2xf32, #tpu.memory_space<vmem>>, vector<8x2xf32>,
    } else {
    }
    return
  }
  func.func @transform_0(%arg0: i32) -> (i32, i32) {
    %c0_i32 = arith.constant 0 : i32
    %c0_i32_0 = arith.constant 0 : i32
    return %arg0, %c0_i32 : i32, i32
  }
  func.func @transform_1(%arg0: i32) -> (i32, i32) {
    %c0_i32 = arith.constant 0 : i32
    %c0_i32_0 = arith.constant 0 : i32
    %c0_i32_1 = arith.constant 0 : i32
    return %c0_i32, %c0_i32_0 : i32, i32
  }
  func.func @transform_2(%arg0: i32) -> (i32, i32) {
    %c0_i32 = arith.constant 0 : i32
    %c0_i32_0 = arith.constant 0 : i32
    %c0_i32_1 = arith.constant 0 : i32
    return %c0_i32, %c0_i32_0 : i32, i32
  }
  func.func @transform_3(%arg0: i32) -> (i32, i32) {
    %c0_i32 = arith.constant 0 : i32
    %c0_i32_0 = arith.constant 0 : i32
    %c0_i32_1 = arith.constant 0 : i32
    return %c0_i32, %c0_i32_0 : i32, i32
  }
  func.func @transform_4(%arg0: i32) -> (i32, i32) {
    %c0_i32 = arith.constant 0 : i32
    %c0_i32_0 = arith.constant 0 : i32
    %c0_i32_1 = arith.constant 0 : i32
    return %c0_i32, %c0_i32_0 : i32, i32
  }
  func.func @transform_5(%arg0: i32) -> (i32, i32) {
    %c0_i32 = arith.constant 0 : i32
    %c0_i32_0 = arith.constant 0 : i32
    %c0_i32_1 = arith.constant 0 : i32
    return %c0_i32, %c0_i32_0 : i32, i32
  }
  func.func @transform_6(%arg0: i32) -> (i32, i32) {
    %c0_i32 = arith.constant 0 : i32
    %c0_i32_0 = arith.constant 0 : i32
    %c0_i32_1 = arith.constant 0 : i32
    return %c0_i32, %c0_i32_0 : i32, i32
  }
  func.func @transform_7(%arg0: i32) -> (i32, i32) {
    %c0_i32 = arith.constant 0 : i32
    %c0_i32_0 = arith.constant 0 : i32
    %c0_i32_1 = arith.constant 0 : i32
    return %c0_i32, %c0_i32_0 : i32, i32
  }
  func.func @transform_8(%arg0: i32) -> (i32, i32) {
    %c0_i32 = arith.constant 0 : i32
    %c0_i32_0 = arith.constant 0 : i32
    %c0_i32_1 = arith.constant 0 : i32
    return %c0_i32, %c0_i32_0 : i32, i32
  }
  func.func @transform_9(%arg0: i32) -> (i32, i32) {
    %c0_i32 = arith.constant 0 : i32
    %c0_i32_0 = arith.constant 0 : i32
    %c0_i32_1 = arith.constant 0 : i32
    return %c0_i32, %c0_i32_0 : i32, i32
  }
  func.func @transform_10(%arg0: i32) -> (i32, i32) {
    %c0_i32 = arith.constant 0 : i32
    %c0_i32_0 = arith.constant 0 : i32
    %c0_i32_1 = arith.constant 0 : i32
    return %c0_i32, %c0_i32_0 : i32, i32
  }
}

</mosaic_0001>

<bundles_post_ra>
// kernel: lstm_agent_forward.1
= control target key start
LH: loop header
LB: loop body
LE: loop exit
PB: predicated region body
PF: predicated region fallthrough
CT: control target
= control target key end

     0   :  { %v58_v0 = vlaneseq  ;;  %v1780_v2 = vmov 1983009808   ;;  %v2620_v4 = vmov 0   ;;  %vm129_vm0 = vcmask 1041408   ;;  %s2609_s1 = inlined_call_operand.vmem [shape: bf16[4,512], index: 1, kind: input, shape index: {}]   ;;  %s2610_s0 = inlined_call_operand.vmem [shape: bf16[64,4], index: 0, kind: input, shape index: {}]   ;;  %s2611_s2 = inlined_call_operand.vmem [shape: bf16[128,512], index: 2, kind: input, shape index: {}]   ;;  %s2612_s6 = inlined_call_operand.vmem [shape: f32[8,128], index: 6, kind: input, shape index: {}]   ;;  %s2613_s3 = inlined_call_operand.vmem [shape: f32[1,512], index: 3, kind: input, shape index: {}]   ;;  %s2614_s7 = inlined_call_operand.vmem [shape: f32[8,128], index: 7, kind: input, shape index: {}]   ;;  %s2615_s4 = inlined_call_operand.vmem [shape: bf16[128,2], index: 4, kind: input, shape index: {}]   ;;  %s2616_s8 = inlined_call_operand.vmem [shape: f32[8,2], index: 8, kind: output, shape index: {0}]   ;;  %s2617_s10 = inlined_call_operand.vmem [shape: f32[8,128], index: 10, kind: output, shape index: {2}]   ;;  %s2618_s9 = inlined_call_operand.vmem [shape: f32[8,128], index: 9, kind: output, shape index: {1}]   ;;  %s2619_s5 = inlined_call_operand.vmem [shape: f32[1,2], index: 5, kind: input, shape index: {}]  }
   0x1   :  { %v55_v1 = vld [vmem:[%s2609_s1] sm:$0xff]  ;;  %v101_v3 = vunpack.c.l.s4 %v1780_v2  ;;  %174 = vmatprep.mubr.bf16.mxu0 %v2620_v4  ;;  %247 = vmatprep.mubr.bf16.mxu1 %v2620_v4  ;;  %v1855_v16 = vld [vmem:[%s2611_s2 + $0xc] ss:$16 sps:$4 sm:$0xff]   ;;  %vm116_vm1 = vcmask 31744   ;;  %v1868_v19 = vld [vmem:[%s2611_s2 + $0x8] ss:$16 sps:$4 sm:$0xff]  }
   0x2   :  { %v1844_v5 = vshrl.u32 %v58_v0, 7  ;;  %v99_v7 = vcombine.high %v55_v1, %v55_v1  ;;  %v1850_v11 = vld [vmem:[%s2611_s2 + $0x4] ss:$16 sps:$4 sm:$0xff]   ;;  %v1863_v18 = vld [vmem:[%s2611_s2] ss:$16 sps:$4 sm:$0xff]   ;;  %v1621_v26 = vld [vmem:[%s2610_s0 + $0x8] sm:$0xff]  }
   0x3   :  { %v102_v6 = vunpack.c.0.s8 %v101_v3  ;;  %v1608_v17 = vld [vmem:[%s2610_s0] sm:$0xff]   ;;  %v1880_v21 = vld [vmem:[%s2611_s2 + $0x2c] ss:$16 sps:$4 sm:$0xff]   ;;  %v1894_v23 = vld [vmem:[%s2611_s2 + $0x28] ss:$16 sps:$4 sm:$0xff]   ;;  %vm1783_vm2 = vmmov 0  }
   0x4   :  { %v1875_v20 = vld [vmem:[%s2611_s2 + $0x24] ss:$16 sps:$4 sm:$0xff]   ;;  %v1887_v22 = vld [vmem:[%s2611_s2 + $0x20] ss:$16 sps:$4 sm:$0xff]   ;;  %v1906_v25 = vld [vmem:[%s2611_s2 + $0x4c] ss:$16 sps:$4 sm:$0xff]  }
   0x5   :  { %v105_v8 = vsub.s32 %v102_v6, %v1844_v5  ;;  %v1901_v24 = vld [vmem:[%s2611_s2 + $0x44] ss:$16 sps:$4 sm:$0xff]   ;;  %v1916_v27 = vld [vmem:[%s2611_s2 + $0x40] ss:$16 sps:$4 sm:$0xff]   ;;  %v1921_v28 = vld [vmem:[%s2611_s2 + $0x48] ss:$16 sps:$4 sm:$0xff]  }
   0x6   :  { %v1928_v29 = vld [vmem:[%s2611_s2 + $0x64] ss:$16 sps:$4 sm:$0xff]   ;;  %v1935_v30 = vld [vmem:[%s2611_s2 + $0x6c] ss:$16 sps:$4 sm:$0xff]   ;;  %v1942_v31 = vld [vmem:[%s2611_s2 + $0x60] ss:$16 sps:$4 sm:$0xff]  }
   0x7   :  { %v106_v9 = vrot.slane %v55_v1, %v105_v8  ;;  %v113_v10 = vrot.slane %v99_v7, %v105_v8  ;;  %v1947_v32 = vld [vmem:[%s2611_s2 + $0x68] ss:$16 sps:$4 sm:$0xff]   ;;  %v1954_v33 = vld [vmem:[%s2611_s2 + $0x84] ss:$16 sps:$4 sm:$0xff]   ;;  %v1961_v34 = vld [vmem:[%s2611_s2 + $0x8c] ss:$16 sps:$4 sm:$0xff]  }
   0x8   :  { %v1634_v35 = vld [vmem:[%s2610_s0 + $0x10] sm:$0xff]   ;;  %v1978_v37 = vld [vmem:[%s2611_s2 + $0x88] ss:$16 sps:$4 sm:$0xff]   ;;  %v1990_v39 = vld [vmem:[%s2611_s2 + $0xac] ss:$16 sps:$4 sm:$0xff]   ;;  %v68_v53 = vsub.s32 2, %v1844_v5 }
   0x9   :  { %v114_v12 = vcombine.high %v106_v9, %v106_v9  ;;  %v115_v13 = vcombine.high %v113_v10, %v113_v10  ;;  %v131_v14 = vsel %vm129_vm0, %v106_v9, 0  ;;  %v137_v15 = vsel %vm129_vm0, %v113_v10, 0  ;;  %v1973_v36 = vld [vmem:[%s2611_s2 + $0x80] ss:$16 sps:$4 sm:$0xff]   ;;  %v1985_v38 = vld [vmem:[%s2611_s2 + $0xa4] ss:$16 sps:$4 sm:$0xff]  }
   0xa   :  { %v1999_v40 = vld [vmem:[%s2611_s2 + $0xa0] ss:$16 sps:$4 sm:$0xff]   ;;  %v2004_v41 = vld [vmem:[%s2611_s2 + $0xa8] ss:$16 sps:$4 sm:$0xff]   ;;  %v2011_v42 = vld [vmem:[%s2611_s2 + $0xc4] ss:$16 sps:$4 sm:$0xff]  }
   0xb   :  { %1523 = vmatprep.subr.msk.bf16.mxu0 %vm129_vm0, %v114_v12  ;;  %1528 = vmatprep.subr.msk.bf16.mxu1 %vm129_vm0, %v115_v13  ;;  %v2016_v43 = vld [vmem:[%s2611_s2 + $0xcc] ss:$16 sps:$4 sm:$0xff]   ;;  %v2028_v45 = vld [vmem:[%s2611_s2 + $0xc0] ss:$16 sps:$4 sm:$0xff]   ;;  %v2033_v46 = vld [vmem:[%s2611_s2 + $0xc8] ss:$16 sps:$4 sm:$0xff]  }
   0xc   :  { %143 = vmatpush1.bf16.msra.mxu0 %v131_v14  ;;  %216 = vmatpush1.bf16.msra.mxu1 %v137_v15  ;;  %v1647_v44 = vld [vmem:[%s2610_s0 + $0x18] sm:$0xff]   ;;  %v2040_v47 = vld [vmem:[%s2611_s2 + $0xe4] ss:$16 sps:$4 sm:$0xff]   ;;  %v2054_v49 = vld [vmem:[%s2611_s2 + $0xe0] ss:$16 sps:$4 sm:$0xff]   ;;  %v72_v54 = vsub.s32 3, %v1844_v5 }
   0xd   :  { %519 = vmatprep.subr.bf16.mxu0 %v1850_v11  ;;  %560 = vmatprep.subr.bf16.mxu1 %v1855_v16  ;;  %v2045_v48 = vld [vmem:[%s2611_s2 + $0xec] ss:$16 sps:$4 sm:$0xff]   ;;  %v2059_v50 = vld [vmem:[%s2611_s2 + $0xe8] ss:$16 sps:$4 sm:$0xff]   ;;  %v37_v51 = vld [vmem:[%s2612_s6] sm:$0xff]  ;;  %v60_v55 = vsub.s32 0, %v1844_v5 }
   0xe   :  { %v326_v52 = vpack.c.bf16 %v37_v51, %v37_v51  ;;  %v56_v56 = vld [vmem:[%s2613_s3] sm:$0xf]  ;;  %v64_v57 = vsub.s32 1, %v1844_v5  ;;  %vm41_vm3 = vcmask 15360  }
   0xf   :  { %1524 = vmatmul.mubr.msk.bf16.vlgmr.msra.gmra.mrb[0].mxu0 %vm116_vm1, %v1608_v17  ;;  %1529 = vmatmul.mubr.msk.bf16.vlgmr.msra.gmra.mrb[0].mxu1 %vm116_vm1, %v1608_v17  ;;  %v2113_v58 = vrot.slane %v56_v56, %v68_v53  ;;  %v2119_v61 = vrot.slane %v56_v56, %v72_v54  ;;  %v61_v62 = vrot.slane %v56_v56, %v60_v55 }
  0x10   :  { %520 = vmatpush1.bf16.msra.mxu0 %v1863_v18  ;;  %561 = vmatpush1.bf16.msra.mxu1 %v1868_v19  ;;  %v65_v1 = vrot.slane %v56_v56, %v64_v57 }
  0x11   :  { %521 = vmatprep.subr.bf16.mxu0 %v1875_v20  ;;  %562 = vmatprep.subr.bf16.mxu1 %v1880_v21 }
  0x12   :  { %184 = vmatprep.mubr.bf16.mxu0 %v2620_v4  ;;  %257 = vmatprep.mubr.bf16.mxu1 %v2620_v4 }
  0x14   :  { %522 = vmatpush1.bf16.msra.mxu0 %v1887_v22  ;;  %563 = vmatpush1.bf16.msra.mxu1 %v1894_v23 }
  0x15   :  { %523 = vmatprep.subr.bf16.mxu0 %v1901_v24  ;;  %564 = vmatprep.subr.bf16.mxu1 %v1906_v25 }
  0x17   :  { %1525 = vmatmul.mubr.msk.bf16.gmra.mrb[4].mxu0 %vm116_vm1, %v1621_v26  ;;  %1530 = vmatmul.mubr.msk.bf16.gmra.mrb[4].mxu1 %vm116_vm1, %v1621_v26 }
  0x18   :  { %524 = vmatpush1.bf16.msra.mxu0 %v1916_v27  ;;  %565 = vmatpush1.bf16.msra.mxu1 %v1921_v28 }
  0x19   :  { %525 = vmatprep.subr.bf16.mxu0 %v1928_v29  ;;  %566 = vmatprep.subr.bf16.mxu1 %v1935_v30 }
  0x1a   :  { %194 = vmatprep.mubr.bf16.mxu0 %v2620_v4  ;;  %267 = vmatprep.mubr.bf16.mxu1 %v2620_v4 }
  0x1c   :  { %526 = vmatpush1.bf16.msra.mxu0 %v1942_v31  ;;  %567 = vmatpush1.bf16.msra.mxu1 %v1947_v32 }
  0x1d   :  { %527 = vmatprep.subr.bf16.mxu0 %v1954_v33  ;;  %568 = vmatprep.subr.bf16.mxu1 %v1961_v34 }
  0x1f   :  { %1526 = vmatmul.mubr.msk.bf16.gmra.mrb[8].mxu0 %vm116_vm1, %v1634_v35  ;;  %1531 = vmatmul.mubr.msk.bf16.gmra.mrb[8].mxu1 %vm116_vm1, %v1634_v35 }
  0x20   :  { %528 = vmatpush1.bf16.msra.mxu0 %v1973_v36  ;;  %569 = vmatpush1.bf16.msra.mxu1 %v1978_v37 }
  0x21   :  { %529 = vmatprep.subr.bf16.mxu0 %v1985_v38  ;;  %570 = vmatprep.subr.bf16.mxu1 %v1990_v39 }
  0x22   :  { %204 = vmatprep.mubr.bf16.mxu0 %v2620_v4  ;;  %277 = vmatprep.mubr.bf16.mxu1 %v2620_v4 }
  0x24   :  { %530 = vmatpush1.bf16.msra.mxu0 %v1999_v40  ;;  %571 = vmatpush1.bf16.msra.mxu1 %v2004_v41 }
  0x25   :  { %531 = vmatprep.subr.bf16.mxu0 %v2011_v42  ;;  %572 = vmatprep.subr.bf16.mxu1 %v2016_v43 }
  0x27   :  { %1527 = vmatmul.mubr.msk.bf16.gmra.mrb[12].mxu0 %vm116_vm1, %v1647_v44  ;;  %1532 = vmatmul.mubr.msk.bf16.gmra.mrb[12].mxu1 %vm116_vm1, %v1647_v44 }
  0x28   :  { %532 = vmatpush1.bf16.msra.mxu0 %v2028_v45  ;;  %573 = vmatpush1.bf16.msra.mxu1 %v2033_v46 }
  0x29   :  { %533 = vmatprep.subr.bf16.mxu0 %v2040_v47  ;;  %574 = vmatprep.subr.bf16.mxu1 %v2045_v48 }
  0x2a   :  { %551 = vmatprep.mubr.bf16.mxu0 %v2620_v4  ;;  %592 = vmatprep.mubr.bf16.mxu1 %v2620_v4 }
  0x2c   :  { %534 = vmatpush1.bf16.msra.mxu0 %v2054_v49  ;;  %575 = vmatpush1.bf16.msra.mxu1 %v2059_v50 }
  0x2d   :  { %628 = vmatprep.subr.bf16.mxu0 %v1850_v11  ;;  %669 = vmatprep.subr.bf16.mxu1 %v1855_v16 }
  0x2f   :  { %552 = vmatmul.mubr.bf16.vlgmr.msra.gmra.mrb[16].mxu0 %v326_v52  ;;  %593 = vmatmul.mubr.bf16.vlgmr.msra.gmra.mrb[16].mxu1 %v326_v52 }
  0x30   :  { %629 = vmatpush1.bf16.msra.mxu0 %v1863_v18  ;;  %670 = vmatpush1.bf16.msra.mxu1 %v1868_v19 }
  0x31   :  { %630 = vmatprep.subr.bf16.mxu0 %v1875_v20  ;;  %671 = vmatprep.subr.bf16.mxu1 %v1880_v21 }
  0x32   :  { %660 = vmatprep.mubr.bf16.mxu0 %v2620_v4  ;;  %701 = vmatprep.mubr.bf16.mxu1 %v2620_v4 }
  0x34   :  { %631 = vmatpush1.bf16.msra.mxu0 %v1887_v22  ;;  %672 = vmatpush1.bf16.msra.mxu1 %v1894_v23 }
  0x35   :  { %632 = vmatprep.subr.bf16.mxu0 %v1901_v24  ;;  %673 = vmatprep.subr.bf16.mxu1 %v1906_v25 }
  0x38   :  { %633 = vmatpush1.bf16.msra.mxu0 %v1916_v27  ;;  %674 = vmatpush1.bf16.msra.mxu1 %v1921_v28 }
  0x39   :  { %634 = vmatprep.subr.bf16.mxu0 %v1928_v29  ;;  %675 = vmatprep.subr.bf16.mxu1 %v1935_v30 }
  0x3c   :  { %635 = vmatpush1.bf16.msra.mxu0 %v1942_v31  ;;  %676 = vmatpush1.bf16.msra.mxu1 %v1947_v32 }
  0x3d   :  { %636 = vmatprep.subr.bf16.mxu0 %v1954_v33  ;;  %677 = vmatprep.subr.bf16.mxu1 %v1961_v34 }
  0x40   :  { %637 = vmatpush1.bf16.msra.mxu0 %v1973_v36  ;;  %678 = vmatpush1.bf16.msra.mxu1 %v1978_v37 }
  0x41   :  { %638 = vmatprep.subr.bf16.mxu0 %v1985_v38  ;;  %679 = vmatprep.subr.bf16.mxu1 %v1990_v39 }
  0x44   :  { %639 = vmatpush1.bf16.msra.mxu0 %v1999_v40  ;;  %680 = vmatpush1.bf16.msra.mxu1 %v2004_v41 }
  0x45   :  { %640 = vmatprep.subr.bf16.mxu0 %v2011_v42  ;;  %681 = vmatprep.subr.bf16.mxu1 %v2016_v43 }
  0x48   :  { %641 = vmatpush1.bf16.msra.mxu0 %v2028_v45  ;;  %682 = vmatpush1.bf16.msra.mxu1 %v2033_v46 }
  0x49   :  { %642 = vmatprep.subr.bf16.mxu0 %v2040_v47  ;;  %683 = vmatprep.subr.bf16.mxu1 %v2045_v48 }
  0x4c   :  { %643 = vmatpush1.bf16.msra.mxu0 %v2054_v49  ;;  %684 = vmatpush1.bf16.msra.mxu1 %v2059_v50 }
  0x4d   :  { %737 = vmatprep.subr.bf16.mxu0 %v1850_v11  ;;  %778 = vmatprep.subr.bf16.mxu1 %v1855_v16 }
  0xe2   :  { %v2115_v59 = vpop.f32.mrb[0].mxu0  ;;  %v2117_v60 = vpop.f32.mrb[0].mxu1 }
  0xe3   :  { %v178_v63 = vpop.f32.mrb[1].mxu0  ;;  %v251_v0 = vpop.f32.mrb[1].mxu1 }
  0xe4   :  { %v180_v2 = vpop.f32.mrb[2].mxu0  ;;  %v253_v3 = vpop.f32.mrb[2].mxu1 }
  0xe5   :  { %v2121_v6 = vadd.f32 %v180_v2, %v61_v62  ;;  %v182_v7 = vpop.f32.mrb[3].mxu0  ;;  %v2124_v8 = vadd.f32 %v253_v3, %v2113_v58  ;;  %v255_v5 = vpop.f32.mrb[3].mxu1 }
  0xe6   :  { %v2126_v9 = vadd.f32 %v182_v7, %v65_v1  ;;  %v2129_v10 = vadd.f32 %v255_v5, %v2119_v61 }
  0xea   :  { %v186_v12 = vpop.f32.mrb[4].mxu0  ;;  %v259_v13 = vpop.f32.mrb[4].mxu1 }
  0xeb   :  { %v2131_v14 = vadd.f32 %v186_v12, %v61_v62  ;;  %v188_v15 = vpop.f32.mrb[5].mxu0  ;;  %v2134_v17 = vadd.f32 %v259_v13, %v2113_v58  ;;  %v261_v26 = vpop.f32.mrb[5].mxu1 }
  0xec   :  { %v2136_v35 = vadd.f32 %v188_v15, %v65_v1  ;;  %v190_v44 = vpop.f32.mrb[6].mxu0  ;;  %v2139_v51 = vadd.f32 %v261_v26, %v2119_v61  ;;  %v263_v52 = vpop.f32.mrb[6].mxu1 }
  0xed   :  { %v2141_v53 = vadd.f32 %v190_v44, %v61_v62  ;;  %v192_v54 = vpop.f32.mrb[7].mxu0  ;;  %v2144_v55 = vadd.f32 %v263_v52, %v2113_v58  ;;  %v265_v56 = vpop.f32.mrb[7].mxu1 }
  0xee   :  { %2622 = vst [vmem:[#allocation5_spill] sm:$0xff] %v2139_v51  ;;  %v2146_v57 = vadd.f32 %v192_v54, %v65_v1  ;;  %v2149_v2 = vadd.f32 %v265_v56, %v2119_v61 }
  0xef   :  { %2623 = vst [vmem:[#allocation6_spill] sm:$0xff] %v2141_v53  ;;  %2624 = vst [vmem:[#allocation7_spill] sm:$0xff] %v2144_v55 }
  0xf0   :  { %2625 = vst [vmem:[#allocation8_spill] sm:$0xff] %v2146_v57  ;;  %2626 = vst [vmem:[#allocation9_spill] sm:$0xff] %v2149_v2 }
  0xf2   :  { %v196_v3 = vpop.f32.mrb[8].mxu0  ;;  %v269_v7 = vpop.f32.mrb[8].mxu1 }
  0xf3   :  { %v2151_v5 = vadd.f32 %v196_v3, %v61_v62  ;;  %v198_v12 = vpop.f32.mrb[9].mxu0  ;;  %v2154_v13 = vadd.f32 %v269_v7, %v2113_v58  ;;  %v271_v15 = vpop.f32.mrb[9].mxu1 }
  0xf4   :  { %v2156_v26 = vadd.f32 %v198_v12, %v65_v1  ;;  %v200_v44 = vpop.f32.mrb[10].mxu0  ;;  %v2159_v52 = vadd.f32 %v271_v15, %v2119_v61  ;;  %v273_v54 = vpop.f32.mrb[10].mxu1 }
  0xf5   :  { %2627 = vst [vmem:[#allocation10_spill] sm:$0xff] %v2151_v5  ;;  %2628 = vst [vmem:[#allocation11_spill] sm:$0xff] %v2154_v13  ;;  %v2161_v4 = vadd.f32 %v200_v44, %v61_v62  ;;  %v202_v56 = vpop.f32.mrb[11].mxu0  ;;  %v2164_v2 = vadd.f32 %v273_v54, %v2113_v58  ;;  %v275_v3 = vpop.f32.mrb[11].mxu1 }
  0xf6   :  { %2629 = vst [vmem:[#allocation12_spill] sm:$0xff] %v2156_v26  ;;  %2630 = vst [vmem:[#allocation13_spill] sm:$0xff] %v2159_v52  ;;  %v2166_v5 = vadd.f32 %v202_v56, %v65_v1  ;;  %v2169_v7 = vadd.f32 %v275_v3, %v2119_v61 }
  0xf7   :  { %2631 = vst [vmem:[#allocation14_spill] sm:$0xff] %v2161_v4  ;;  %2632 = vst [vmem:[#allocation15_spill] sm:$0xff] %v2164_v2 }
  0xf8   :  { %2633 = vst [vmem:[#allocation16_spill] sm:$0xff] %v2166_v5  ;;  %2634 = vst [vmem:[#allocation17_spill] sm:$0xff] %v2169_v7 }
  0xfa   :  { %v206_v13 = vpop.f32.mrb[12].mxu0  ;;  %v279_v12 = vpop.f32.mrb[12].mxu1 }
  0xfb   :  { %v2171_v26 = vadd.f32 %v206_v13, %v61_v62  ;;  %v208_v57 = vpop.f32.mrb[13].mxu0  ;;  %v2174_v15 = vadd.f32 %v279_v12, %v2113_v58  ;;  %v281_v44 = vpop.f32.mrb[13].mxu1 }
  0xfc   :  { %v2176_v4 = vadd.f32 %v208_v57, %v65_v1  ;;  %v210_v52 = vpop.f32.mrb[14].mxu0  ;;  %v2179_v54 = vadd.f32 %v281_v44, %v2119_v61  ;;  %v283_v56 = vpop.f32.mrb[14].mxu1  ;;  %v177_v57 = vadd.f32 %v2115_v59, %v61_v62  ;;  %v179_v44 = vadd.f32 %v178_v63, %v65_v1 }
  0xfd   :  { %2635 = vst [vmem:[#allocation18_spill] sm:$0xff] %v2171_v26  ;;  %2636 = vst [vmem:[#allocation19_spill] sm:$0xff] %v2174_v15  ;;  %v2181_v5 = vadd.f32 %v210_v52, %v61_v62  ;;  %v212_v3 = vpop.f32.mrb[15].mxu0  ;;  %v2184_v7 = vadd.f32 %v283_v56, %v2113_v58  ;;  %v285_v13 = vpop.f32.mrb[15].mxu1 }
  0xfe   :  { %2637 = vst [vmem:[#allocation20_spill] sm:$0xff] %v2176_v4  ;;  %2638 = vst [vmem:[#allocation21_spill] sm:$0xff] %v2179_v54  ;;  %v2186_v26 = vadd.f32 %v212_v3, %v65_v1  ;;  %v2189_v12 = vadd.f32 %v285_v13, %v2119_v61  ;;  %v250_v4 = vadd.f32 %v2117_v60, %v2113_v58  ;;  %v39_v1 = vld [vmem:[%s2614_s7] sm:$0xff] }
  0xff   :  { %2639 = vst [vmem:[#allocation22_spill] sm:$0xff] %v2181_v5  ;;  %2640 = vst [vmem:[#allocation23_spill] sm:$0xff] %v2184_v7  ;;  %v252_v54 = vadd.f32 %v251_v0, %v2119_v61 }
 0x100   :  { %2641 = vst [vmem:[#allocation24_spill] sm:$0xff] %v2186_v26  ;;  %2642 = vst [vmem:[#allocation25_spill] sm:$0xff] %v2189_v12 }
 0x102   :  { %v553_v52 = vpop.f32.mrb[16].mxu0  ;;  %v594_v5 = vpop.f32.mrb[16].mxu1 }
 0x103   :  { %v601_v15 = vadd.f32 %v553_v52, %v177_v57  ;;  %v603_v2 = vadd.f32 %v594_v5, %v250_v4  ;;  %v555_v56 = vpop.f32.mrb[17].mxu0  ;;  %v596_v7 = vpop.f32.mrb[17].mxu1  ;;  %v2643_v57 = vmov 0  }
 0x104   :  { %v602_v55 = vadd.f32 %v555_v56, %v179_v44  ;;  %v604_v3 = vadd.f32 %v596_v7, %v252_v54  ;;  %v557_v26 = vpop.f32.mrb[18].mxu0  ;;  %v598_v53 = vpop.f32.mrb[18].mxu1 }
 0x105   :  { %v605_v13 = vmul.f32 0.5, %v601_v15  ;;  %v558_v12 = vpop.f32.mrb[19].mxu0  ;;  %v599_v51 = vpop.f32.mrb[19].mxu1  ;;  %v607_v58 = vmul.f32 0.5, %v603_v2 }
 0x106   :  { %v606_v59 = vmul.f32 0.5, %v602_v55 }
 0x107   :  { %1668 = vtanh.f32 %v605_v13 }
 0x108   :  { %1670 = vtanh.f32 %v606_v59 }
 0x109   :  { %1672 = vtanh.f32 %v604_v3 }
 0x10a   :  { %1674 = vtanh.f32 %v607_v58 }
 0x111   :  { %v1669_v60 = vpop.eup %1668 }
 0x112   :  { %v611_v61 = vmul.f32 0.5, %v1669_v60  ;;  %v1671_v62 = vpop.eup %1670 }
 0x113   :  { %v612_v4 = vmul.f32 0.5, %v1671_v62  ;;  %v1673_v0 = vpop.eup %1672 }
 0x114   :  { %v614_v63 = vadd.f32 0.5, %v611_v61  ;;  %v1675_v55 = vpop.eup %1674 }
 0x115   :  { %v615_v53 = vadd.f32 0.5, %v612_v4  ;;  %v613_v2 = vmul.f32 0.5, %v1675_v55 }
 0x116   :  { %v619_v5 = vmul.f32 %v1673_v0, %v614_v63 }
 0x117   :  { %v618_v26 = vmul.f32 %v615_v53, %v39_v1  ;;  %v616_v7 = vadd.f32 0.5, %v613_v2 }
 0x119   :  { %v2198_v51 = vadd.f32 %v619_v5, %v618_v26 }
 0x11b   :  { %1676 = vtanh.f32 %v2198_v51 }
 0x125   :  { %v1677_v15 = vpop.eup %1676 }
 0x126   :  { %v622_v54 = vmul.f32 %v1677_v15, %v616_v7 }
 0x128   :  { %v627_v12 = vpack.c.bf16 %v622_v54, %v622_v54 }
 0x12a   :  { %661 = vmatmul.mubr.bf16.vlgmr.msra.gmra.mrb[20].mxu0 %v627_v12  ;;  %702 = vmatmul.mubr.bf16.vlgmr.msra.gmra.mrb[20].mxu1 %v627_v12 }
 0x12b   :  { %738 = vmatpush1.bf16.msra.mxu0 %v1863_v18  ;;  %779 = vmatpush1.bf16.msra.mxu1 %v1868_v19 }
 0x12c   :  { %739 = vmatprep.subr.bf16.mxu0 %v1875_v20  ;;  %780 = vmatprep.subr.bf16.mxu1 %v1880_v21 }
 0x12d   :  { %769 = vmatprep.mubr.bf16.mxu0 %v2643_v57  ;;  %810 = vmatprep.mubr.bf16.mxu1 %v2643_v57 }
 0x12f   :  { %740 = vmatpush1.bf16.msra.mxu0 %v1887_v22  ;;  %781 = vmatpush1.bf16.msra.mxu1 %v1894_v23 }
 0x130   :  { %741 = vmatprep.subr.bf16.mxu0 %v1901_v24  ;;  %782 = vmatprep.subr.bf16.mxu1 %v1906_v25 }
 0x133   :  { %742 = vmatpush1.bf16.msra.mxu0 %v1916_v27  ;;  %783 = vmatpush1.bf16.msra.mxu1 %v1921_v28 }
 0x134   :  { %743 = vmatprep.subr.bf16.mxu0 %v1928_v29  ;;  %784 = vmatprep.subr.bf16.mxu1 %v1935_v30 }
 0x137   :  { %744 = vmatpush1.bf16.msra.mxu0 %v1942_v31  ;;  %785 = vmatpush1.bf16.msra.mxu1 %v1947_v32 }
 0x138   :  { %745 = vmatprep.subr.bf16.mxu0 %v1954_v33  ;;  %786 = vmatprep.subr.bf16.mxu1 %v1961_v34 }
 0x13b   :  { %746 = vmatpush1.bf16.msra.mxu0 %v1973_v36  ;;  %787 = vmatpush1.bf16.msra.mxu1 %v1978_v37 }
 0x13c   :  { %747 = vmatprep.subr.bf16.mxu0 %v1985_v38  ;;  %788 = vmatprep.subr.bf16.mxu1 %v1990_v39 }
 0x13f   :  { %748 = vmatpush1.bf16.msra.mxu0 %v1999_v40  ;;  %789 = vmatpush1.bf16.msra.mxu1 %v2004_v41 }
 0x140   :  { %749 = vmatprep.subr.bf16.mxu0 %v2011_v42  ;;  %790 = vmatprep.subr.bf16.mxu1 %v2016_v43 }
 0x143   :  { %750 = vmatpush1.bf16.msra.mxu0 %v2028_v45  ;;  %791 = vmatpush1.bf16.msra.mxu1 %v2033_v46 }
 0x144   :  { %751 = vmatprep.subr.bf16.mxu0 %v2040_v47  ;;  %792 = vmatprep.subr.bf16.mxu1 %v2045_v48 }
 0x147   :  { %752 = vmatpush1.bf16.msra.mxu0 %v2054_v49  ;;  %793 = vmatpush1.bf16.msra.mxu1 %v2059_v50 }
 0x148   :  { %846 = vmatprep.subr.bf16.mxu0 %v1850_v11  ;;  %887 = vmatprep.subr.bf16.mxu1 %v1855_v16 }
 0x1fd   :  { %v662_v44 = vpop.f32.mrb[20].mxu0  ;;  %v703_v52 = vpop.f32.mrb[20].mxu1 }
 0x1fe   :  { %v710_v56 = vadd.f32 %v662_v44, %v2121_v6  ;;  %v712_v3 = vadd.f32 %v703_v52, %v2124_v8  ;;  %v664_v13 = vpop.f32.mrb[21].mxu0  ;;  %v705_v59 = vpop.f32.mrb[21].mxu1 }
 0x1ff   :  { %v711_v58 = vadd.f32 %v664_v13, %v2126_v9  ;;  %v713_v60 = vadd.f32 %v705_v59, %v2129_v10  ;;  %v666_v61 = vpop.f32.mrb[22].mxu0  ;;  %v707_v62 = vpop.f32.mrb[22].mxu1 }
 0x200   :  { %v714_v63 = vmul.f32 0.5, %v710_v56  ;;  %v667_v4 = vpop.f32.mrb[23].mxu0  ;;  %v708_v0 = vpop.f32.mrb[23].mxu1  ;;  %v716_v53 = vmul.f32 0.5, %v712_v3 }
 0x201   :  { %v715_v1 = vmul.f32 0.5, %v711_v58 }
 0x202   :  { %1678 = vtanh.f32 %v714_v63  ;;  %v2644_v63 = vld [vmem:[#allocation5_spill] sm:$0xff] }
 0x203   :  { %1680 = vtanh.f32 %v715_v1 }
 0x204   :  { %1682 = vtanh.f32 %v713_v60 }
 0x205   :  { %1684 = vtanh.f32 %v716_v53 }
 0x20c   :  { %v1679_v5 = vpop.eup %1678 }
 0x20d   :  { %v720_v6 = vmul.f32 0.5, %v1679_v5  ;;  %v1681_v26 = vpop.eup %1680 }
 0x20e   :  { %v721_v55 = vmul.f32 0.5, %v1681_v26  ;;  %v1683_v2 = vpop.eup %1682 }
 0x20f   :  { %v723_v8 = vadd.f32 0.5, %v720_v6  ;;  %v1685_v54 = vpop.eup %1684 }
 0x210   :  { %v724_v9 = vadd.f32 0.5, %v721_v55  ;;  %v722_v12 = vmul.f32 0.5, %v1685_v54 }
 0x211   :  { %v728_v7 = vmul.f32 %v1683_v2, %v723_v8 }
 0x212   :  { %v727_v10 = vmul.f32 %v724_v9, %v2198_v51  ;;  %v725_v44 = vadd.f32 0.5, %v722_v12 }
 0x214   :  { %v2240_v15 = vadd.f32 %v728_v7, %v727_v10 }
 0x216   :  { %1686 = vtanh.f32 %v2240_v15 }
 0x220   :  { %v1687_v52 = vpop.eup %1686 }
 0x221   :  { %v731_v56 = vmul.f32 %v1687_v52, %v725_v44 }
 0x223   :  { %v736_v3 = vpack.c.bf16 %v731_v56, %v731_v56 }
 0x225   :  { %770 = vmatmul.mubr.bf16.vlgmr.msra.gmra.mrb[24].mxu0 %v736_v3  ;;  %811 = vmatmul.mubr.bf16.vlgmr.msra.gmra.mrb[24].mxu1 %v736_v3 }
 0x226   :  { %847 = vmatpush1.bf16.msra.mxu0 %v1863_v18  ;;  %888 = vmatpush1.bf16.msra.mxu1 %v1868_v19 }
 0x227   :  { %848 = vmatprep.subr.bf16.mxu0 %v1875_v20  ;;  %889 = vmatprep.subr.bf16.mxu1 %v1880_v21 }
 0x228   :  { %878 = vmatprep.mubr.bf16.mxu0 %v2643_v57  ;;  %919 = vmatprep.mubr.bf16.mxu1 %v2643_v57 }
 0x22a   :  { %849 = vmatpush1.bf16.msra.mxu0 %v1887_v22  ;;  %890 = vmatpush1.bf16.msra.mxu1 %v1894_v23 }
 0x22b   :  { %850 = vmatprep.subr.bf16.mxu0 %v1901_v24  ;;  %891 = vmatprep.subr.bf16.mxu1 %v1906_v25 }
 0x22e   :  { %851 = vmatpush1.bf16.msra.mxu0 %v1916_v27  ;;  %892 = vmatpush1.bf16.msra.mxu1 %v1921_v28 }
 0x22f   :  { %852 = vmatprep.subr.bf16.mxu0 %v1928_v29  ;;  %893 = vmatprep.subr.bf16.mxu1 %v1935_v30 }
 0x232   :  { %853 = vmatpush1.bf16.msra.mxu0 %v1942_v31  ;;  %894 = vmatpush1.bf16.msra.mxu1 %v1947_v32 }
 0x233   :  { %854 = vmatprep.subr.bf16.mxu0 %v1954_v33  ;;  %895 = vmatprep.subr.bf16.mxu1 %v1961_v34 }
 0x236   :  { %855 = vmatpush1.bf16.msra.mxu0 %v1973_v36  ;;  %896 = vmatpush1.bf16.msra.mxu1 %v1978_v37 }
 0x237   :  { %856 = vmatprep.subr.bf16.mxu0 %v1985_v38  ;;  %897 = vmatprep.subr.bf16.mxu1 %v1990_v39 }
 0x23a   :  { %857 = vmatpush1.bf16.msra.mxu0 %v1999_v40  ;;  %898 = vmatpush1.bf16.msra.mxu1 %v2004_v41 }
 0x23b   :  { %858 = vmatprep.subr.bf16.mxu0 %v2011_v42  ;;  %899 = vmatprep.subr.bf16.mxu1 %v2016_v43 }
 0x23e   :  { %859 = vmatpush1.bf16.msra.mxu0 %v2028_v45  ;;  %900 = vmatpush1.bf16.msra.mxu1 %v2033_v46 }
 0x23f   :  { %860 = vmatprep.subr.bf16.mxu0 %v2040_v47  ;;  %901 = vmatprep.subr.bf16.mxu1 %v2045_v48 }
 0x242   :  { %861 = vmatpush1.bf16.msra.mxu0 %v2054_v49  ;;  %902 = vmatpush1.bf16.msra.mxu1 %v2059_v50 }
 0x243   :  { %955 = vmatprep.subr.bf16.mxu0 %v1850_v11  ;;  %996 = vmatprep.subr.bf16.mxu1 %v1855_v16 }
 0x2f8   :  { %v771_v51 = vpop.f32.mrb[24].mxu0  ;;  %v812_v13 = vpop.f32.mrb[24].mxu1 }
 0x2f9   :  { %v819_v59 = vadd.f32 %v771_v51, %v2131_v14  ;;  %v821_v58 = vadd.f32 %v812_v13, %v2134_v17  ;;  %v773_v60 = vpop.f32.mrb[25].mxu0  ;;  %v814_v61 = vpop.f32.mrb[25].mxu1 }
 0x2fa   :  { %v820_v62 = vadd.f32 %v773_v60, %v2136_v35  ;;  %v822_v4 = vadd.f32 %v814_v61, %v2644_v63  ;;  %v775_v0 = vpop.f32.mrb[26].mxu0  ;;  %v816_v1 = vpop.f32.mrb[26].mxu1  ;;  %v2646_v61 = vld [vmem:[#allocation7_spill] sm:$0xff] }
 0x2fb   :  { %v823_v53 = vmul.f32 0.5, %v819_v59  ;;  %v776_v5 = vpop.f32.mrb[27].mxu0  ;;  %v817_v6 = vpop.f32.mrb[27].mxu1  ;;  %v825_v8 = vmul.f32 0.5, %v821_v58  ;;  %v2645_v58 = vld [vmem:[#allocation6_spill] sm:$0xff]  ;;  %v2647_v0 = vld [vmem:[#allocation8_spill] sm:$0xff] }
 0x2fc   :  { %v824_v26 = vmul.f32 0.5, %v820_v62 }
 0x2fd   :  { %1688 = vtanh.f32 %v823_v53  ;;  %v2648_v53 = vld [vmem:[#allocation9_spill] sm:$0xff] }
 0x2fe   :  { %1690 = vtanh.f32 %v824_v26 }
 0x2ff   :  { %1692 = vtanh.f32 %v822_v4 }
 0x300   :  { %1694 = vtanh.f32 %v825_v8 }
 0x307   :  { %v1689_v55 = vpop.eup %1688 }
 0x308   :  { %v829_v14 = vmul.f32 0.5, %v1689_v55  ;;  %v1691_v2 = vpop.eup %1690 }
 0x309   :  { %v830_v9 = vmul.f32 0.5, %v1691_v2  ;;  %v1693_v7 = vpop.eup %1692 }
 0x30a   :  { %v832_v17 = vadd.f32 0.5, %v829_v14  ;;  %v1695_v44 = vpop.eup %1694 }
 0x30b   :  { %v833_v35 = vadd.f32 0.5, %v830_v9  ;;  %v831_v52 = vmul.f32 0.5, %v1695_v44 }
 0x30c   :  { %v837_v10 = vmul.f32 %v1693_v7, %v832_v17 }
 0x30d   :  { %v836_v54 = vmul.f32 %v833_v35, %v2240_v15  ;;  %v834_v56 = vadd.f32 0.5, %v831_v52 }
 0x30f   :  { %v2282_v12 = vadd.f32 %v837_v10, %v836_v54 }
 0x311   :  { %1696 = vtanh.f32 %v2282_v12 }
 0x31b   :  { %v1697_v3 = vpop.eup %1696 }
 0x31c   :  { %v840_v51 = vmul.f32 %v1697_v3, %v834_v56 }
 0x31e   :  { %v845_v13 = vpack.c.bf16 %v840_v51, %v840_v51 }
 0x320   :  { %879 = vmatmul.mubr.bf16.vlgmr.msra.gmra.mrb[28].mxu0 %v845_v13  ;;  %920 = vmatmul.mubr.bf16.vlgmr.msra.gmra.mrb[28].mxu1 %v845_v13 }
 0x321   :  { %956 = vmatpush1.bf16.msra.mxu0 %v1863_v18  ;;  %997 = vmatpush1.bf16.msra.mxu1 %v1868_v19 }
 0x322   :  { %957 = vmatprep.subr.bf16.mxu0 %v1875_v20  ;;  %998 = vmatprep.subr.bf16.mxu1 %v1880_v21 }
 0x323   :  { %987 = vmatprep.mubr.bf16.mxu0 %v2643_v57  ;;  %1028 = vmatprep.mubr.bf16.mxu1 %v2643_v57 }
 0x325   :  { %958 = vmatpush1.bf16.msra.mxu0 %v1887_v22  ;;  %999 = vmatpush1.bf16.msra.mxu1 %v1894_v23 }
 0x326   :  { %959 = vmatprep.subr.bf16.mxu0 %v1901_v24  ;;  %1000 = vmatprep.subr.bf16.mxu1 %v1906_v25 }
 0x329   :  { %960 = vmatpush1.bf16.msra.mxu0 %v1916_v27  ;;  %1001 = vmatpush1.bf16.msra.mxu1 %v1921_v28 }
 0x32a   :  { %961 = vmatprep.subr.bf16.mxu0 %v1928_v29  ;;  %1002 = vmatprep.subr.bf16.mxu1 %v1935_v30 }
 0x32d   :  { %962 = vmatpush1.bf16.msra.mxu0 %v1942_v31  ;;  %1003 = vmatpush1.bf16.msra.mxu1 %v1947_v32 }
 0x32e   :  { %963 = vmatprep.subr.bf16.mxu0 %v1954_v33  ;;  %1004 = vmatprep.subr.bf16.mxu1 %v1961_v34 }
 0x331   :  { %964 = vmatpush1.bf16.msra.mxu0 %v1973_v36  ;;  %1005 = vmatpush1.bf16.msra.mxu1 %v1978_v37 }
 0x332   :  { %965 = vmatprep.subr.bf16.mxu0 %v1985_v38  ;;  %1006 = vmatprep.subr.bf16.mxu1 %v1990_v39 }
 0x335   :  { %966 = vmatpush1.bf16.msra.mxu0 %v1999_v40  ;;  %1007 = vmatpush1.bf16.msra.mxu1 %v2004_v41 }
 0x336   :  { %967 = vmatprep.subr.bf16.mxu0 %v2011_v42  ;;  %1008 = vmatprep.subr.bf16.mxu1 %v2016_v43 }
 0x339   :  { %968 = vmatpush1.bf16.msra.mxu0 %v2028_v45  ;;  %1009 = vmatpush1.bf16.msra.mxu1 %v2033_v46 }
 0x33a   :  { %969 = vmatprep.subr.bf16.mxu0 %v2040_v47  ;;  %1010 = vmatprep.subr.bf16.mxu1 %v2045_v48 }
 0x33d   :  { %970 = vmatpush1.bf16.msra.mxu0 %v2054_v49  ;;  %1011 = vmatpush1.bf16.msra.mxu1 %v2059_v50 }
 0x33e   :  { %1064 = vmatprep.subr.bf16.mxu0 %v1850_v11  ;;  %1105 = vmatprep.subr.bf16.mxu1 %v1855_v16 }
 0x3f3   :  { %v880_v15 = vpop.f32.mrb[28].mxu0  ;;  %v921_v59 = vpop.f32.mrb[28].mxu1 }
 0x3f4   :  { %v928_v60 = vadd.f32 %v880_v15, %v2645_v58  ;;  %v930_v62 = vadd.f32 %v921_v59, %v2646_v61  ;;  %v882_v63 = vpop.f32.mrb[29].mxu0  ;;  %v923_v4 = vpop.f32.mrb[29].mxu1 }
 0x3f5   :  { %v929_v1 = vadd.f32 %v882_v63, %v2647_v0  ;;  %v931_v5 = vadd.f32 %v923_v4, %v2648_v53  ;;  %v884_v6 = vpop.f32.mrb[30].mxu0  ;;  %v925_v26 = vpop.f32.mrb[30].mxu1 }
 0x3f6   :  { %v932_v8 = vmul.f32 0.5, %v928_v60  ;;  %v885_v55 = vpop.f32.mrb[31].mxu0  ;;  %v926_v14 = vpop.f32.mrb[31].mxu1  ;;  %v934_v16 = vmul.f32 0.5, %v930_v62 }
 0x3f7   :  { %v933_v11 = vmul.f32 0.5, %v929_v1 }
 0x3f8   :  { %1698 = vtanh.f32 %v932_v8 }
 0x3f9   :  { %1700 = vtanh.f32 %v933_v11 }
 0x3fa   :  { %1702 = vtanh.f32 %v931_v5 }
 0x3fb   :  { %1704 = vtanh.f32 %v934_v16 }
 0x402   :  { %v1699_v2 = vpop.eup %1698 }
 0x403   :  { %v938_v17 = vmul.f32 0.5, %v1699_v2  ;;  %v1701_v9 = vpop.eup %1700 }
 0x404   :  { %v939_v35 = vmul.f32 0.5, %v1701_v9  ;;  %v1703_v10 = vpop.eup %1702 }
 0x405   :  { %v941_v7 = vadd.f32 0.5, %v938_v17  ;;  %v1705_v3 = vpop.eup %1704 }
 0x406   :  { %v942_v54 = vadd.f32 0.5, %v939_v35  ;;  %v940_v51 = vmul.f32 0.5, %v1705_v3  ;;  %v2408_v3 = vld [vmem:[%s2611_s2 + $0x20] ss:$16 sps:$4 sm:$0xff]  }
 0x407   :  { %v946_v44 = vmul.f32 %v1703_v10, %v941_v7 }
 0x408   :  { %v945_v52 = vmul.f32 %v942_v54, %v2282_v12  ;;  %v943_v13 = vadd.f32 0.5, %v940_v51  ;;  %v2382_v54 = vld [vmem:[%s2611_s2] ss:$16 sps:$4 sm:$0xff]   ;;  %v2414_v51 = vld [vmem:[%s2611_s2 + $0x28] ss:$16 sps:$4 sm:$0xff]  }
 0x40a   :  { %v2324_v56 = vadd.f32 %v946_v44, %v945_v52  ;;  %v2388_v44 = vld [vmem:[%s2611_s2 + $0x8] ss:$16 sps:$4 sm:$0xff]   ;;  %v2394_v52 = vld [vmem:[%s2611_s2 + $0x24] ss:$16 sps:$4 sm:$0xff]  }
 0x40c   :  { %1706 = vtanh.f32 %v2324_v56 }
 0x416   :  { %v1707_v15 = vpop.eup %1706 }
 0x417   :  { %v949_v59 = vmul.f32 %v1707_v15, %v943_v13  ;;  %v2420_v13 = vld [vmem:[%s2611_s2 + $0x44] ss:$16 sps:$4 sm:$0xff]   ;;  %v2426_v15 = vld [vmem:[%s2611_s2 + $0x4c] ss:$16 sps:$4 sm:$0xff]  }
 0x419   :  { %v954_v58 = vpack.c.bf16 %v949_v59, %v949_v59  ;;  %v2432_v59 = vld [vmem:[%s2611_s2 + $0x40] ss:$16 sps:$4 sm:$0xff]  }
 0x41b   :  { %988 = vmatmul.mubr.bf16.vlgmr.msra.gmra.mrb[32].mxu0 %v954_v58  ;;  %1029 = vmatmul.mubr.bf16.vlgmr.msra.gmra.mrb[32].mxu1 %v954_v58  ;;  %v2438_v58 = vld [vmem:[%s2611_s2 + $0x48] ss:$16 sps:$4 sm:$0xff]  }
 0x41c   :  { %1065 = vmatpush1.bf16.msra.mxu0 %v1863_v18  ;;  %1106 = vmatpush1.bf16.msra.mxu1 %v1868_v19  ;;  %v2362_v18 = vld [vmem:[%s2611_s2 + $0x4] ss:$16 sps:$4 sm:$0xff]   ;;  %v2368_v19 = vld [vmem:[%s2611_s2 + $0xc] ss:$16 sps:$4 sm:$0xff]  }
 0x41d   :  { %1066 = vmatprep.subr.bf16.mxu0 %v1875_v20  ;;  %1107 = vmatprep.subr.bf16.mxu1 %v1880_v21 }
 0x41e   :  { %1096 = vmatprep.mubr.bf16.mxu0 %v2643_v57  ;;  %1137 = vmatprep.mubr.bf16.mxu1 %v2643_v57 }
 0x420   :  { %1067 = vmatpush1.bf16.msra.mxu0 %v1887_v22  ;;  %1108 = vmatpush1.bf16.msra.mxu1 %v1894_v23  ;;  %v2649_v22 = vld [vmem:[#allocation10_spill] sm:$0xff] }
 0x421   :  { %1068 = vmatprep.subr.bf16.mxu0 %v1901_v24  ;;  %1109 = vmatprep.subr.bf16.mxu1 %v1906_v25  ;;  %v2650_v24 = vld [vmem:[#allocation11_spill] sm:$0xff] }
 0x424   :  { %1069 = vmatpush1.bf16.msra.mxu0 %v1916_v27  ;;  %1110 = vmatpush1.bf16.msra.mxu1 %v1921_v28 }
 0x425   :  { %1070 = vmatprep.subr.bf16.mxu0 %v1928_v29  ;;  %1111 = vmatprep.subr.bf16.mxu1 %v1935_v30  ;;  %v2651_v29 = vld [vmem:[#allocation12_spill] sm:$0xff] }
 0x428   :  { %1071 = vmatpush1.bf16.msra.mxu0 %v1942_v31  ;;  %1112 = vmatpush1.bf16.msra.mxu1 %v1947_v32  ;;  %v2652_v31 = vld [vmem:[#allocation13_spill] sm:$0xff] }
 0x429   :  { %1072 = vmatprep.subr.bf16.mxu0 %v1954_v33  ;;  %1113 = vmatprep.subr.bf16.mxu1 %v1961_v34 }
 0x42c   :  { %1073 = vmatpush1.bf16.msra.mxu0 %v1973_v36  ;;  %1114 = vmatpush1.bf16.msra.mxu1 %v1978_v37 }
 0x42d   :  { %1074 = vmatprep.subr.bf16.mxu0 %v1985_v38  ;;  %1115 = vmatprep.subr.bf16.mxu1 %v1990_v39 }
 0x430   :  { %1075 = vmatpush1.bf16.msra.mxu0 %v1999_v40  ;;  %1116 = vmatpush1.bf16.msra.mxu1 %v2004_v41 }
 0x431   :  { %1076 = vmatprep.subr.bf16.mxu0 %v2011_v42  ;;  %1117 = vmatprep.subr.bf16.mxu1 %v2016_v43 }
 0x434   :  { %1077 = vmatpush1.bf16.msra.mxu0 %v2028_v45  ;;  %1118 = vmatpush1.bf16.msra.mxu1 %v2033_v46 }
 0x435   :  { %1078 = vmatprep.subr.bf16.mxu0 %v2040_v47  ;;  %1119 = vmatprep.subr.bf16.mxu1 %v2045_v48 }
 0x438   :  { %1079 = vmatpush1.bf16.msra.mxu0 %v2054_v49  ;;  %1120 = vmatpush1.bf16.msra.mxu1 %v2059_v50 }
 0x439   :  { %1173 = vmatprep.subr.bf16.mxu0 %v2362_v18  ;;  %1214 = vmatprep.subr.bf16.mxu1 %v2368_v19 }
 0x4ee   :  { %v989_v20 = vpop.f32.mrb[32].mxu0  ;;  %v1030_v21 = vpop.f32.mrb[32].mxu1 }
 0x4ef   :  { %v1037_v23 = vadd.f32 %v989_v20, %v2649_v22  ;;  %v1039_v25 = vadd.f32 %v1030_v21, %v2650_v24  ;;  %v991_v27 = vpop.f32.mrb[33].mxu0  ;;  %v1032_v28 = vpop.f32.mrb[33].mxu1  ;;  %v2444_v20 = vld [vmem:[%s2611_s2 + $0x64] ss:$16 sps:$4 sm:$0xff]   ;;  %v2450_v21 = vld [vmem:[%s2611_s2 + $0x6c] ss:$16 sps:$4 sm:$0xff]  }
 0x4f0   :  { %v1038_v30 = vadd.f32 %v991_v27, %v2651_v29  ;;  %v1040_v32 = vadd.f32 %v1032_v28, %v2652_v31  ;;  %v993_v12 = vpop.f32.mrb[34].mxu0  ;;  %v1034_v60 = vpop.f32.mrb[34].mxu1  ;;  %v2456_v22 = vld [vmem:[%s2611_s2 + $0x60] ss:$16 sps:$4 sm:$0xff]  }
 0x4f1   :  { %v1041_v61 = vmul.f32 0.5, %v1037_v23  ;;  %v994_v62 = vpop.f32.mrb[35].mxu0  ;;  %v1035_v63 = vpop.f32.mrb[35].mxu1  ;;  %v1043_v0 = vmul.f32 0.5, %v1039_v25  ;;  %v2462_v23 = vld [vmem:[%s2611_s2 + $0x68] ss:$16 sps:$4 sm:$0xff]  }
 0x4f2   :  { %v1042_v4 = vmul.f32 0.5, %v1038_v30 }
 0x4f3   :  { %1708 = vtanh.f32 %v1041_v61 }
 0x4f4   :  { %1710 = vtanh.f32 %v1042_v4 }
 0x4f5   :  { %1712 = vtanh.f32 %v1040_v32 }
 0x4f6   :  { %1714 = vtanh.f32 %v1043_v0 }
 0x4fd   :  { %v1709_v1 = vpop.eup %1708 }
 0x4fe   :  { %v1047_v53 = vmul.f32 0.5, %v1709_v1  ;;  %v1711_v5 = vpop.eup %1710 }
 0x4ff   :  { %v1048_v26 = vmul.f32 0.5, %v1711_v5  ;;  %v1713_v8 = vpop.eup %1712  ;;  %v1765_v5 = vld [vmem:[%s2611_s2 + $0x8c] ss:$16 sps:$4 sm:$0xff]  }
 0x500   :  { %v1050_v6 = vadd.f32 0.5, %v1047_v53  ;;  %v1715_v2 = vpop.eup %1714 }
 0x501   :  { %v1051_v55 = vadd.f32 0.5, %v1048_v26  ;;  %v1049_v17 = vmul.f32 0.5, %v1715_v2  ;;  %v1767_v26 = vld [vmem:[%s2611_s2 + $0x88] ss:$16 sps:$4 sm:$0xff]   ;;  %v1773_v2 = vld [vmem:[%s2611_s2 + $0xcc] ss:$16 sps:$4 sm:$0xff]  }
 0x502   :  { %v1055_v14 = vmul.f32 %v1713_v8, %v1050_v6  ;;  %v1766_v6 = vld [vmem:[%s2611_s2 + $0x80] ss:$16 sps:$4 sm:$0xff]   ;;  %v1768_v8 = vld [vmem:[%s2611_s2 + $0xa4] ss:$16 sps:$4 sm:$0xff]  }
 0x503   :  { %v1054_v11 = vmul.f32 %v1051_v55, %v2324_v56  ;;  %v1052_v9 = vadd.f32 0.5, %v1049_v17  ;;  %v2400_v56 = vld [vmem:[%s2611_s2 + $0x2c] ss:$16 sps:$4 sm:$0xff]   ;;  %v1774_v17 = vld [vmem:[%s2611_s2 + $0xc0] ss:$16 sps:$4 sm:$0xff]  }
 0x504   :  { %v1769_v55 = vld [vmem:[%s2611_s2 + $0xac] ss:$16 sps:$4 sm:$0xff]  }
 0x505   :  { %v2376_v16 = vadd.f32 %v1055_v14, %v1054_v11  ;;  %v1770_v14 = vld [vmem:[%s2611_s2 + $0xa0] ss:$16 sps:$4 sm:$0xff]   ;;  %v1771_v11 = vld [vmem:[%s2611_s2 + $0xa8] ss:$16 sps:$4 sm:$0xff]  }
 0x507   :  { %1716 = vtanh.f32 %v2376_v16 }
 0x511   :  { %v1717_v7 = vpop.eup %1716 }
 0x512   :  { %v1058_v35 = vmul.f32 %v1717_v7, %v1052_v9  ;;  %v1775_v9 = vld [vmem:[%s2611_s2 + $0xc8] ss:$16 sps:$4 sm:$0xff]   ;;  %v1776_v7 = vld [vmem:[%s2611_s2 + $0xe4] ss:$16 sps:$4 sm:$0xff]  }
 0x514   :  { %v1063_v10 = vpack.c.bf16 %v1058_v35, %v1058_v35  ;;  %v1777_v35 = vld [vmem:[%s2611_s2 + $0xec] ss:$16 sps:$4 sm:$0xff]  }
 0x516   :  { %1097 = vmatmul.mubr.bf16.vlgmr.msra.gmra.mrb[36].mxu0 %v1063_v10  ;;  %1138 = vmatmul.mubr.bf16.vlgmr.msra.gmra.mrb[36].mxu1 %v1063_v10  ;;  %v1778_v10 = vld [vmem:[%s2611_s2 + $0xe0] ss:$16 sps:$4 sm:$0xff]  }
 0x517   :  { %1174 = vmatpush1.bf16.msra.mxu0 %v2382_v54  ;;  %1215 = vmatpush1.bf16.msra.mxu1 %v2388_v44 }
 0x518   :  { %1175 = vmatprep.subr.bf16.mxu0 %v2394_v52  ;;  %1216 = vmatprep.subr.bf16.mxu1 %v2400_v56 }
 0x519   :  { %1205 = vmatprep.mubr.bf16.mxu0 %v2643_v57  ;;  %1246 = vmatprep.mubr.bf16.mxu1 %v2643_v57 }
 0x51b   :  { %1176 = vmatpush1.bf16.msra.mxu0 %v2408_v3  ;;  %1217 = vmatpush1.bf16.msra.mxu1 %v2414_v51 }
 0x51c   :  { %1177 = vmatprep.subr.bf16.mxu0 %v2420_v13  ;;  %1218 = vmatprep.subr.bf16.mxu1 %v2426_v15 }
 0x51f   :  { %1178 = vmatpush1.bf16.msra.mxu0 %v2432_v59  ;;  %1219 = vmatpush1.bf16.msra.mxu1 %v2438_v58 }
 0x520   :  { %1179 = vmatprep.subr.bf16.mxu0 %v2444_v20  ;;  %1220 = vmatprep.subr.bf16.mxu1 %v2450_v21 }
 0x523   :  { %1180 = vmatpush1.bf16.msra.mxu0 %v2456_v22  ;;  %1221 = vmatpush1.bf16.msra.mxu1 %v2462_v23 }
 0x524   :  { %1181 = vmatprep.subr.bf16.mxu0 %v1954_v33  ;;  %1222 = vmatprep.subr.bf16.mxu1 %v1961_v34 }
 0x527   :  { %1182 = vmatpush1.bf16.msra.mxu0 %v1973_v36  ;;  %1223 = vmatpush1.bf16.msra.mxu1 %v1978_v37  ;;  %v2653_v36 = vld [vmem:[#allocation14_spill] sm:$0xff] }
 0x528   :  { %1183 = vmatprep.subr.bf16.mxu0 %v1985_v38  ;;  %1224 = vmatprep.subr.bf16.mxu1 %v1990_v39  ;;  %v2654_v38 = vld [vmem:[#allocation15_spill] sm:$0xff] }
 0x52b   :  { %1184 = vmatpush1.bf16.msra.mxu0 %v1999_v40  ;;  %1225 = vmatpush1.bf16.msra.mxu1 %v2004_v41 }
 0x52c   :  { %1185 = vmatprep.subr.bf16.mxu0 %v2011_v42  ;;  %1226 = vmatprep.subr.bf16.mxu1 %v2016_v43  ;;  %v2655_v42 = vld [vmem:[#allocation16_spill] sm:$0xff] }
 0x52f   :  { %1186 = vmatpush1.bf16.msra.mxu0 %v2028_v45  ;;  %1227 = vmatpush1.bf16.msra.mxu1 %v2033_v46  ;;  %v2656_v45 = vld [vmem:[#allocation17_spill] sm:$0xff] }
 0x530   :  { %1187 = vmatprep.subr.bf16.mxu0 %v2040_v47  ;;  %1228 = vmatprep.subr.bf16.mxu1 %v2045_v48 }
 0x533   :  { %1188 = vmatpush1.bf16.msra.mxu0 %v2054_v49  ;;  %1229 = vmatpush1.bf16.msra.mxu1 %v2059_v50 }
 0x534   :  { %1282 = vmatprep.subr.bf16.mxu0 %v2362_v18  ;;  %1323 = vmatprep.subr.bf16.mxu1 %v2368_v19 }
 0x5e9   :  { %v1098_v33 = vpop.f32.mrb[36].mxu0  ;;  %v1139_v34 = vpop.f32.mrb[36].mxu1 }
 0x5ea   :  { %v1146_v37 = vadd.f32 %v1098_v33, %v2653_v36  ;;  %v1148_v39 = vadd.f32 %v1139_v34, %v2654_v38  ;;  %v1100_v40 = vpop.f32.mrb[37].mxu0  ;;  %v1141_v41 = vpop.f32.mrb[37].mxu1 }
 0x5eb   :  { %v1147_v43 = vadd.f32 %v1100_v40, %v2655_v42  ;;  %v1149_v46 = vadd.f32 %v1141_v41, %v2656_v45  ;;  %v1102_v47 = vpop.f32.mrb[38].mxu0  ;;  %v1143_v48 = vpop.f32.mrb[38].mxu1 }
 0x5ec   :  { %v1150_v49 = vmul.f32 0.5, %v1146_v37  ;;  %v1103_v50 = vpop.f32.mrb[39].mxu0  ;;  %v1144_v24 = vpop.f32.mrb[39].mxu1  ;;  %v1152_v19 = vmul.f32 0.5, %v1148_v39 }
 0x5ed   :  { %v1151_v18 = vmul.f32 0.5, %v1147_v43 }
 0x5ee   :  { %1718 = vtanh.f32 %v1150_v49 }
 0x5ef   :  { %1720 = vtanh.f32 %v1151_v18 }
 0x5f0   :  { %1722 = vtanh.f32 %v1149_v46 }
 0x5f1   :  { %1724 = vtanh.f32 %v1152_v19 }
 0x5f8   :  { %v1719_v25 = vpop.eup %1718 }
 0x5f9   :  { %v1156_v27 = vmul.f32 0.5, %v1719_v25  ;;  %v1721_v28 = vpop.eup %1720 }
 0x5fa   :  { %v1157_v30 = vmul.f32 0.5, %v1721_v28  ;;  %v1723_v31 = vpop.eup %1722 }
 0x5fb   :  { %v1159_v29 = vadd.f32 0.5, %v1156_v27  ;;  %v1725_v62 = vpop.eup %1724 }
 0x5fc   :  { %v1160_v32 = vadd.f32 0.5, %v1157_v30  ;;  %v1158_v63 = vmul.f32 0.5, %v1725_v62  ;;  %v1782_v30 = vmov 0.0   ;;  %v1666_v62 = vld [vmem:[%s2615_s4 + $0x30] sm:$0xff]  }
 0x5fd   :  { %v1164_v12 = vmul.f32 %v1723_v31, %v1159_v29  ;;  %v1660_v29 = vld [vmem:[%s2615_s4] sm:$0xff]   ;;  %v1661_v31 = vld [vmem:[%s2615_s4 + $0x8] sm:$0xff]   ;;  %42 = vst.msk [vmem:[%s2616_s8] sm:$0xff] %vm41_vm3, %v1782_v30 }
 0x5fe   :  { %v1163_v60 = vmul.f32 %v1160_v32, %v2376_v16  ;;  %v1161_v4 = vadd.f32 0.5, %v1158_v63  ;;  %v1772_v16 = vld [vmem:[%s2611_s2 + $0xc4] ss:$16 sps:$4 sm:$0xff]   ;;  %v1667_v63 = vld [vmem:[%s2615_s4 + $0x38] sm:$0xff]  }
 0x5ff   :  { %v1662_v32 = vld [vmem:[%s2615_s4 + $0x10] sm:$0xff]  }
 0x600   :  { %v2488_v61 = vadd.f32 %v1164_v12, %v1163_v60  ;;  %v1663_v12 = vld [vmem:[%s2615_s4 + $0x18] sm:$0xff]   ;;  %v1664_v60 = vld [vmem:[%s2615_s4 + $0x20] sm:$0xff]  }
 0x602   :  { %1726 = vtanh.f32 %v2488_v61 }
 0x60c   :  { %v1727_v0 = vpop.eup %1726 }
 0x60d   :  { %v1167_v1 = vmul.f32 %v1727_v0, %v1161_v4 }
 0x60f   :  { %v1172_v53 = vpack.c.bf16 %v1167_v1, %v1167_v1  ;;  %v2661_v1 = vld [vmem:[#allocation22_spill] sm:$0xff] }
 0x611   :  { %1206 = vmatmul.mubr.bf16.vlgmr.msra.gmra.mrb[40].mxu0 %v1172_v53  ;;  %1247 = vmatmul.mubr.bf16.vlgmr.msra.gmra.mrb[40].mxu1 %v1172_v53 }
 0x612   :  { %1283 = vmatpush1.bf16.msra.mxu0 %v2382_v54  ;;  %1324 = vmatpush1.bf16.msra.mxu1 %v2388_v44  ;;  %v1779_v54 = vld [vmem:[%s2611_s2 + $0xe8] ss:$16 sps:$4 sm:$0xff]  }
 0x613   :  { %1284 = vmatprep.subr.bf16.mxu0 %v2394_v52  ;;  %1325 = vmatprep.subr.bf16.mxu1 %v2400_v56  ;;  %v2657_v56 = vld [vmem:[#allocation18_spill] sm:$0xff] }
 0x614   :  { %1314 = vmatprep.mubr.bf16.mxu0 %v2643_v57  ;;  %1355 = vmatprep.mubr.bf16.mxu1 %v2643_v57  ;;  %v1764_v57 = vld [vmem:[%s2611_s2 + $0x84] ss:$16 sps:$4 sm:$0xff]  }
 0x616   :  { %1285 = vmatpush1.bf16.msra.mxu0 %v2408_v3  ;;  %1326 = vmatpush1.bf16.msra.mxu1 %v2414_v51  ;;  %v2658_v51 = vld [vmem:[#allocation19_spill] sm:$0xff] }
 0x617   :  { %1286 = vmatprep.subr.bf16.mxu0 %v2420_v13  ;;  %1327 = vmatprep.subr.bf16.mxu1 %v2426_v15 }
 0x61a   :  { %1287 = vmatpush1.bf16.msra.mxu0 %v2432_v59  ;;  %1328 = vmatpush1.bf16.msra.mxu1 %v2438_v58  ;;  %v2659_v58 = vld [vmem:[#allocation20_spill] sm:$0xff] }
 0x61b   :  { %1288 = vmatprep.subr.bf16.mxu0 %v2444_v20  ;;  %1329 = vmatprep.subr.bf16.mxu1 %v2450_v21  ;;  %v2660_v21 = vld [vmem:[#allocation21_spill] sm:$0xff] }
 0x61e   :  { %1289 = vmatpush1.bf16.msra.mxu0 %v2456_v22  ;;  %1330 = vmatpush1.bf16.msra.mxu1 %v2462_v23 }
 0x61f   :  { %1290 = vmatprep.subr.bf16.mxu0 %v1764_v57  ;;  %1331 = vmatprep.subr.bf16.mxu1 %v1765_v5  ;;  %v2662_v57 = vld [vmem:[#allocation23_spill] sm:$0xff] }
 0x622   :  { %1291 = vmatpush1.bf16.msra.mxu0 %v1766_v6  ;;  %1332 = vmatpush1.bf16.msra.mxu1 %v1767_v26 }
 0x623   :  { %1292 = vmatprep.subr.bf16.mxu0 %v1768_v8  ;;  %1333 = vmatprep.subr.bf16.mxu1 %v1769_v55  ;;  %v2663_v8 = vld [vmem:[#allocation24_spill] sm:$0xff] }
 0x626   :  { %1293 = vmatpush1.bf16.msra.mxu0 %v1770_v14  ;;  %1334 = vmatpush1.bf16.msra.mxu1 %v1771_v11  ;;  %v2664_v14 = vld [vmem:[#allocation25_spill] sm:$0xff] }
 0x627   :  { %1294 = vmatprep.subr.bf16.mxu0 %v1772_v16  ;;  %1335 = vmatprep.subr.bf16.mxu1 %v1773_v2 }
 0x62a   :  { %1295 = vmatpush1.bf16.msra.mxu0 %v1774_v17  ;;  %1336 = vmatpush1.bf16.msra.mxu1 %v1775_v9 }
 0x62b   :  { %1296 = vmatprep.subr.bf16.mxu0 %v1776_v7  ;;  %1337 = vmatprep.subr.bf16.mxu1 %v1777_v35 }
 0x62e   :  { %1297 = vmatpush1.bf16.msra.mxu0 %v1778_v10  ;;  %1338 = vmatpush1.bf16.msra.mxu1 %v1779_v54 }
 0x62f   :  { %1583 = vmatprep.subr.bf16.mxu0 %v1782_v30 }
 0x6e4   :  { %v1207_v44 = vpop.f32.mrb[40].mxu0  ;;  %v1248_v52 = vpop.f32.mrb[40].mxu1 }
 0x6e5   :  { %v1255_v3 = vadd.f32 %v1207_v44, %v2657_v56  ;;  %v1257_v13 = vadd.f32 %v1248_v52, %v2658_v51  ;;  %v1209_v15 = vpop.f32.mrb[41].mxu0  ;;  %v1250_v59 = vpop.f32.mrb[41].mxu1 }
 0x6e6   :  { %v1256_v20 = vadd.f32 %v1209_v15, %v2659_v58  ;;  %v1258_v22 = vadd.f32 %v1250_v59, %v2660_v21  ;;  %v1211_v23 = vpop.f32.mrb[42].mxu0  ;;  %v1252_v33 = vpop.f32.mrb[42].mxu1 }
 0x6e7   :  { %v1259_v34 = vmul.f32 0.5, %v1255_v3  ;;  %v1212_v36 = vpop.f32.mrb[43].mxu0  ;;  %v1253_v37 = vpop.f32.mrb[43].mxu1  ;;  %v1261_v39 = vmul.f32 0.5, %v1257_v13 }
 0x6e8   :  { %v1260_v38 = vmul.f32 0.5, %v1256_v20  ;;  %v1565_v36 = vld [vmem:[%s2619_s5] ss:$0 sm:$0xff] }
 0x6e9   :  { %1728 = vtanh.f32 %v1259_v34 }
 0x6ea   :  { %1730 = vtanh.f32 %v1260_v38 }
 0x6eb   :  { %1732 = vtanh.f32 %v1258_v22 }
 0x6ec   :  { %1734 = vtanh.f32 %v1261_v39 }
 0x6f3   :  { %v1729_v40 = vpop.eup %1728 }
 0x6f4   :  { %v1265_v41 = vmul.f32 0.5, %v1729_v40  ;;  %v1731_v42 = vpop.eup %1730 }
 0x6f5   :  { %v1266_v45 = vmul.f32 0.5, %v1731_v42  ;;  %v1733_v46 = vpop.eup %1732 }
 0x6f6   :  { %v1268_v43 = vadd.f32 0.5, %v1265_v41  ;;  %v1735_v24 = vpop.eup %1734 }
 0x6f7   :  { %v1269_v47 = vadd.f32 0.5, %v1266_v45  ;;  %v1267_v18 = vmul.f32 0.5, %v1735_v24 }
 0x6f8   :  { %v1273_v48 = vmul.f32 %v1733_v46, %v1268_v43 }
 0x6f9   :  { %v1272_v49 = vmul.f32 %v1269_v47, %v2488_v61  ;;  %v1270_v19 = vadd.f32 0.5, %v1267_v18  ;;  %v1665_v61 = vld [vmem:[%s2615_s4 + $0x28] sm:$0xff]  }
 0x6fb   :  { %v2560_v50 = vadd.f32 %v1273_v48, %v1272_v49 }
 0x6fd   :  { %1736 = vtanh.f32 %v2560_v50 }
 0x707   :  { %v1737_v25 = vpop.eup %1736 }
 0x708   :  { %v1276_v27 = vmul.f32 %v1737_v25, %v1270_v19 }
 0x70a   :  { %v1281_v28 = vpack.c.bf16 %v1276_v27, %v1276_v27 }
 0x70c   :  { %1315 = vmatmul.mubr.bf16.vlgmr.msra.gmra.mrb[44].mxu0 %v1281_v28  ;;  %1356 = vmatmul.mubr.bf16.vlgmr.msra.gmra.mrb[44].mxu1 %v1281_v28 }
 0x70d   :  { %1584 = vmatpush3.bf16.msra.mxu0 %v1660_v29  ;;  %1599 = vmatprep.mubr.msk.bf16.mxu0 %vm1783_vm2, %v1782_v30 }
 0x70e   :  { %1585 = vmatprep.subr.bf16.mxu0 %v1782_v30 }
 0x711   :  { %1586 = vmatpush3.bf16.msra.mxu0 %v1661_v31 }
 0x712   :  { %1587 = vmatprep.subr.bf16.mxu0 %v1782_v30 }
 0x715   :  { %1588 = vmatpush3.bf16.msra.mxu0 %v1662_v32 }
 0x716   :  { %1589 = vmatprep.subr.bf16.mxu0 %v1782_v30 }
 0x719   :  { %1590 = vmatpush3.bf16.msra.mxu0 %v1663_v12 }
 0x71a   :  { %1591 = vmatprep.subr.bf16.mxu0 %v1782_v30 }
 0x71d   :  { %1592 = vmatpush3.bf16.msra.mxu0 %v1664_v60 }
 0x71e   :  { %1593 = vmatprep.subr.bf16.mxu0 %v1782_v30 }
 0x721   :  { %1594 = vmatpush3.bf16.msra.mxu0 %v1665_v61 }
 0x722   :  { %1595 = vmatprep.subr.bf16.mxu0 %v1782_v30 }
 0x725   :  { %1596 = vmatpush3.bf16.msra.mxu0 %v1666_v62 }
 0x726   :  { %1597 = vmatprep.subr.bf16.mxu0 %v1782_v30 }
 0x729   :  { %1598 = vmatpush3.bf16.msra.mxu0 %v1667_v63 }
 0x7df   :  { %v1316_v4 = vpop.f32.mrb[44].mxu0  ;;  %v1357_v0 = vpop.f32.mrb[44].mxu1 }
 0x7e0   :  { %v1364_v53 = vadd.f32 %v1316_v4, %v2661_v1  ;;  %v1366_v5 = vadd.f32 %v1357_v0, %v2662_v57  ;;  %v1318_v6 = vpop.f32.mrb[45].mxu0  ;;  %v1359_v26 = vpop.f32.mrb[45].mxu1 }
 0x7e1   :  { %v1365_v55 = vadd.f32 %v1318_v6, %v2663_v8  ;;  %v1367_v11 = vadd.f32 %v1359_v26, %v2664_v14  ;;  %v1320_v16 = vpop.f32.mrb[46].mxu0  ;;  %v1361_v2 = vpop.f32.mrb[46].mxu1 }
 0x7e2   :  { %v1368_v17 = vmul.f32 0.5, %v1364_v53  ;;  %v1321_v9 = vpop.f32.mrb[47].mxu0  ;;  %v1362_v7 = vpop.f32.mrb[47].mxu1  ;;  %v1370_v10 = vmul.f32 0.5, %v1366_v5 }
 0x7e3   :  { %v1369_v35 = vmul.f32 0.5, %v1365_v55 }
 0x7e4   :  { %1738 = vtanh.f32 %v1368_v17 }
 0x7e5   :  { %1740 = vtanh.f32 %v1369_v35 }
 0x7e6   :  { %1742 = vtanh.f32 %v1367_v11 }
 0x7e7   :  { %1744 = vtanh.f32 %v1370_v10 }
 0x7ee   :  { %v1739_v54 = vpop.eup %1738 }
 0x7ef   :  { %v1374_v44 = vmul.f32 0.5, %v1739_v54  ;;  %v1741_v52 = vpop.eup %1740 }
 0x7f0   :  { %v1375_v3 = vmul.f32 0.5, %v1741_v52  ;;  %v1743_v51 = vpop.eup %1742 }
 0x7f1   :  { %v1377_v56 = vadd.f32 0.5, %v1374_v44  ;;  %v1745_v20 = vpop.eup %1744 }
 0x7f2   :  { %v1378_v13 = vadd.f32 0.5, %v1375_v3  ;;  %v1376_v21 = vmul.f32 0.5, %v1745_v20 }
 0x7f3   :  { %v1382_v15 = vmul.f32 %v1743_v51, %v1377_v56 }
 0x7f4   :  { %v1381_v59 = vmul.f32 %v1378_v13, %v2560_v50  ;;  %v1379_v22 = vadd.f32 0.5, %v1376_v21 }
 0x7f6   :  { %v1383_v58 = vadd.f32 %v1382_v15, %v1381_v59 }
 0x7f8   :  { %1746 = vtanh.f32 %v1383_v58  ;;  %1392 = vst [vmem:[%s2617_s10] sm:$0xff] %v1383_v58 }
 0x802   :  { %v1747_v23 = vpop.eup %1746 }
 0x803   :  { %v1385_v33 = vmul.f32 %v1747_v23, %v1379_v22 }
 0x805   :  { %1391 = vst [vmem:[%s2618_s9] sm:$0xff] %v1385_v33  ;;  %v1393_v34 = vpack.c.bf16 %v1385_v33, %v1385_v33 }
 0x807   :  { %1600 = vmatmul.mubr.bf16.vlgmr.msra.gmra.mrb[48].mxu0 %v1393_v34 }
 0x8da   :  { %v1499_v37 = vpop.f32.mrb[48].mxu0 }
 0x8db   :  { %v1500_v38 = vadd.f32 %v1565_v36, %v1499_v37  ;;  %v1601_v39 = vpop.f32.mrb[49].mxu0 }
 0x8dc   :  { %v1502_v40 = vpop.f32.mrb[50].mxu0 }
 0x8dd   :  { %1506 = vst.msk [vmem:[%s2616_s8] sm:$0xff] %vm41_vm3, %v1500_v38  ;;  %v1602_v41 = vpop.f32.mrb[51].mxu0 }

</bundles_post_ra>
